<compile_context>
chip_gen: v6e
topology: v6e:2x2x1
jax: 0.10.0
libtpu: 0.0.40
codegen_flags: <defaults>
</compile_context>

<pallas_src>
import functools
import math

import jax
import jax.numpy as jnp
from jax.experimental import pallas as pl
from jax.experimental.pallas import tpu as pltpu


# ----------------------------------------------------------------------------
# Kernel 1: conv1 (1x1) + bias + LayerNorm([C,H,W]) + ReLU, one sample per step
# ----------------------------------------------------------------------------
def _conv1_ln_relu_kernel(x_ref, w_ref, b_ref, g_ref, bt_ref, o_ref, *,
                          inv_count, eps):
    x = x_ref[0]                                    # (Cin, L) f32, L = H*W
    w = w_ref[...]                                  # (C1, Cin) f32
    cin = x.shape[0]

    if cin <= 8:
        # K is tiny (Cin=4): a handful of VPU broadcast FMAs beats an MXU matmul
        # whose contraction dim would be ~97% padding.
        acc = jnp.zeros((w.shape[0], x.shape[1]), jnp.float32) + b_ref[...]
        for ci in range(cin):                       # static, unrolled
            acc = acc + w[:, ci:ci + 1] * x[ci:ci + 1, :]
    else:
        acc = jnp.dot(w, x, preferred_element_type=jnp.float32) + b_ref[...]

    # LayerNorm over the whole sample (f32, centered two-pass) + affine + ReLU.
    mean = jnp.sum(acc) * inv_count
    d = acc - mean
    var = jnp.sum(d * d) * inv_count
    rstd = jax.lax.rsqrt(var + eps)
    y = d * rstd * g_ref[...] + bt_ref[...]
    o_ref[0] = jnp.maximum(y, 0.0).astype(o_ref.dtype)


def conv1_ln_relu(xf, w1, b1, g1, bt1, eps=1e-5):
    """xf: (N, Cin, L) f32 -> (N, C1, L) f32 (conv1 + LN1 + ReLU)."""
    N, Cin, L = xf.shape
    C1 = w1.shape[0]
    kern = functools.partial(_conv1_ln_relu_kernel,
                             inv_count=1.0 / float(C1 * L), eps=eps)
    return pl.pallas_call(
        kern,
        out_shape=jax.ShapeDtypeStruct((N, C1, L), jnp.float32),
        grid=(N,),
        in_specs=[
            pl.BlockSpec((1, Cin, L), lambda n: (n, 0, 0)),
            pl.BlockSpec((C1, Cin), lambda n: (0, 0)),   # params: block index constant
            pl.BlockSpec((C1, 1), lambda n: (0, 0)),     # across n -> fetched once
            pl.BlockSpec((C1, L), lambda n: (0, 0)),
            pl.BlockSpec((C1, L), lambda n: (0, 0)),
        ],
        out_specs=pl.BlockSpec((1, C1, L), lambda n: (n, 0, 0)),
        compiler_params=pltpu.CompilerParams(dimension_semantics=("parallel",)),
    )(xf, w1, b1, g1, bt1)


# ----------------------------------------------------------------------------
# Kernel 2: conv2 (3x3,'same') + bias + LayerNorm([C,H,W]) + ReLU, one sample/step
#
# Input is the zero-padded sample flattened channel-major: (C1, (H+3)*(W+2)).
# For output position r = h*(W+2) + w on the padded grid, tap (kh,kw) reads flat
# input index r + (W+2)*kh + kw, so every tap is one contiguous lane-shifted slice.
# Columns w in {W, W+1} of each row are throw-away pad columns: they are excluded
# from the LN statistics via a precomputed mask and stripped by the caller.
# ----------------------------------------------------------------------------
def _conv2_ln_relu_kernel(x_ref, w_ref, b_ref, m_ref, g_ref, bt_ref, o_ref, *,
                          wp, l_win, inv_count, eps):
    x = x_ref[0]                                    # (C1, (H+3)*Wp) f32
    c2 = o_ref.shape[1]

    acc = jnp.zeros((c2, l_win), jnp.float32)
    for kh in range(3):                             # 9 static taps, each a full-width
        for kw in range(3):                         # (C2,C1)@(C1,l_win) contraction
            s = wp * kh + kw
            acc = acc + jnp.dot(w_ref[kh * 3 + kw], x[:, s:s + l_win],
                                preferred_element_type=jnp.float32)
    acc = acc + b_ref[...]                          # (C2, 1) broadcast

    m = m_ref[...]                                  # (1, l_win): 1 on real pixels
    mean = jnp.sum(acc * m) * inv_count
    d = (acc - mean) * m
    var = jnp.sum(d * d) * inv_count
    rstd = jax.lax.rsqrt(var + eps)
    # gamma/beta are zero on pad columns, so garbage positions store 0 and are
    # sliced away by the wrapper.
    y = (acc - mean) * rstd * g_ref[...] + bt_ref[...]
    o_ref[0] = jnp.maximum(y, 0.0).astype(o_ref.dtype)


def conv2_ln_relu(xpf, w2, b2, mask, g2, bt2, *, H, W, eps=1e-5):
    """xpf: (N, C1, (H+3)*(W+2)) f32 padded+flattened -> (N, C2, H*(W+2)) f32."""
    N, C1, FL = xpf.shape
    C2 = w2.shape[1]
    Wp = W + 2
    Lw = H * Wp
    kern = functools.partial(_conv2_ln_relu_kernel, wp=Wp, l_win=Lw,
                             inv_count=1.0 / float(C2 * H * W), eps=eps)
    return pl.pallas_call(
        kern,
        out_shape=jax.ShapeDtypeStruct((N, C2, Lw), jnp.float32),
        grid=(N,),
        in_specs=[
            pl.BlockSpec((1, C1, FL), lambda n: (n, 0, 0)),
            pl.BlockSpec((9, C2, C1), lambda n: (0, 0, 0)),
            pl.BlockSpec((C2, 1), lambda n: (0, 0)),
            pl.BlockSpec((1, Lw), lambda n: (0, 0)),
            pl.BlockSpec((C2, Lw), lambda n: (0, 0)),
            pl.BlockSpec((C2, Lw), lambda n: (0, 0)),
        ],
        out_specs=pl.BlockSpec((1, C2, Lw), lambda n: (n, 0, 0)),
        compiler_params=pltpu.CompilerParams(dimension_semantics=("parallel",)),
    )(xpf, w2, b2, mask, g2, bt2)


# ----------------------------------------------------------------------------
# One-time parameter preparation (hoisted out of the forward pass)
# ----------------------------------------------------------------------------
def prepare_params(raw, H, W):
    C1, Cin = raw['c1w'].shape[0], raw['c1w'].shape[1]
    C2 = raw['c2w'].shape[0]
    Wp = W + 2
    Lw = H * Wp

    def pad_flat_chw(p):    # (C, H, W) -> (C, H*(W+2)), zeros in the pad columns
        return jnp.pad(p, ((0, 0), (0, 0), (0, 2))).reshape(p.shape[0], Lw)

    mask = (jnp.arange(Lw) % Wp < W).astype(jnp.float32).reshape(1, Lw)

    return {
        'w1':  raw['c1w'].reshape(C1, Cin).astype(jnp.float32),
        'b1':  raw['c1b'].reshape(C1, 1).astype(jnp.float32),
        'g1':  raw['ln1w'].reshape(C1, H * W).astype(jnp.float32),
        'bt1': raw['ln1b'].reshape(C1, H * W).astype(jnp.float32),
        # taps laid out tap-major: (9, C2, C1) with tap index kh*3+kw
        'w2':  jnp.transpose(raw['c2w'], (2, 3, 0, 1)).reshape(9, C2, C1)
                  .astype(jnp.float32),
        'b2':  raw['c2b'].reshape(C2, 1).astype(jnp.float32),
        'mask2': mask,
        'g2':  pad_flat_chw(raw['ln2w']).astype(jnp.float32),
        'bt2': pad_flat_chw(raw['ln2b']).astype(jnp.float32),
    }


# ----------------------------------------------------------------------------
# DenseLayer forward: conv1 -> ln1 -> relu -> conv2 -> ln2 -> relu
# ----------------------------------------------------------------------------
def dense_layer_forward(x, p):
    """x: (N, Cin, H, W) f32 (NCHW) -> (N, growth_rate, H, W) f32 (NCHW)."""
    N, Cin, H, W = x.shape
    C1 = p['w1'].shape[0]
    C2 = p['w2'].shape[1]
    Wp = W + 2

    xf = x.reshape(N, Cin, H * W).astype(jnp.float32)
    a = conv1_ln_relu(xf, p['w1'], p['b1'], p['g1'], p['bt1'])         # (N, C1, H*W)

    # spatial zero-pad (+1 top, +2 bottom, +1/+1 width: extra bottom row keeps all
    # 9 shifted tap windows in bounds), then flatten -> per-sample (C1, (H+3)*(W+2))
    ap = jnp.pad(a.reshape(N, C1, H, W), ((0, 0), (0, 0), (1, 2), (1, 1)))
    apf = ap.reshape(N, C1, (H + 3) * Wp)

    y = conv2_ln_relu(apf, p['w2'], p['b2'], p['mask2'], p['g2'], p['bt2'],
                      H=H, W=W)                                        # (N, C2, H*Wp)
    return y.reshape(N, C2, H, Wp)[:, :, :, :W]


def init_dense_layer(key, feature_maps, in_channels, growth_rate, rows, cols):
    k1, k2, k3, k4, k5, k6 = jax.random.split(key, 6)
    c1w = jax.random.normal(k1, (feature_maps, in_channels, 1, 1),
                            jnp.float32) / math.sqrt(in_channels)
    c1b = jax.random.normal(k2, (feature_maps,), jnp.float32) * 0.01
    c2w = jax.random.normal(k3, (growth_rate, feature_maps, 3, 3),
                            jnp.float32) / math.sqrt(feature_maps * 9)
    c2b = jax.random.normal(k4, (growth_rate,), jnp.float32) * 0.01
    return {
        'c1w': c1w, 'c1b': c1b,
        'ln1w': 1.0 + 0.1 * jax.random.normal(k5, (feature_maps, rows, cols), jnp.float32),
        'ln1b': jnp.zeros((feature_maps, rows, cols), jnp.float32),
        'c2w': c2w, 'c2b': c2b,
        'ln2w': 1.0 + 0.1 * jax.random.normal(k6, (growth_rate, rows, cols), jnp.float32),
        'ln2b': jnp.zeros((growth_rate, rows, cols), jnp.float32),
    }


# ----------------------------------------------------------------------------
if __name__ == "__main__":
    batch, in_channels, rows, cols = 2, 4, 16, 16
    feature_maps, growth_rate = 32, 8

    key = jax.random.PRNGKey(0)
    kp, kx = jax.random.split(key)
    raw = init_dense_layer(kp, feature_maps, in_channels, growth_rate, rows, cols)
    params = jax.tree_util.tree_map(jax.block_until_ready,
                                    prepare_params(raw, rows, cols))   # one-time prep
    x = jax.random.normal(kx, (batch, in_channels, rows, cols), jnp.float32)  # NCHW

    fwd = jax.jit(dense_layer_forward)
    y = fwd(x, params)
    y = jax.block_until_ready(y)

    assert y.shape == (batch, growth_rate, rows, cols), y.shape
    assert bool(jnp.all(jnp.isfinite(y)))
    print("KERNEL_OK")
</pallas_src>

<mosaic_0001>
module attributes {stable_mosaic.version = 11 : i64} {
  func.func @_conv1_ln_relu_kernel(%arg0: i32, %arg1: memref<1x4x256xf32, #tpu.memory_space<vmem>>, %arg2: memref<32x4xf32, #tpu.memory_space<vmem>>, %arg3: memref<32x1xf32, #tpu.memory_space<vmem>>, %arg4: memref<32x256xf32, #tpu.memory_space<vmem>>, %arg5: memref<32x256xf32, #tpu.memory_space<vmem>>, %arg6: memref<1x32x256xf32, #tpu.memory_space<vmem>>) attributes {dimension_semantics = [#tpu.dimension_semantics<parallel>], iteration_bounds = array<i64: 2>, scalar_prefetch = 0 : i64, scratch_operands = 0 : i64, tpu.core_type = #tpu.core_type<tc>, window_params = [{transform_indices = @transform_0, window_bounds = array<i64: 1, 4, 256>}, {pipeline_mode = #tpu.pipeline_mode<synchronous>, transform_indices = @transform_1, window_bounds = array<i64: 32, 4>}, {pipeline_mode = #tpu.pipeline_mode<synchronous>, transform_indices = @transform_2, window_bounds = array<i64: 32, 1>}, {pipeline_mode = #tpu.pipeline_mode<synchronous>, transform_indices = @transform_3, window_bounds = array<i64: 32, 256>}, {pipeline_mode = #tpu.pipeline_mode<synchronous>, transform_indices = @transform_4, window_bounds = array<i64: 32, 256>}, {transform_indices = @transform_5, window_bounds = array<i64: 1, 32, 256>}]} {
    %c0 = arith.constant 0 : index
    %c0_0 = arith.constant 0 : index
    %c0_1 = arith.constant 0 : index
    %0 = vector.load %arg1[%c0, %c0_0, %c0_1] : memref<1x4x256xf32, #tpu.memory_space<vmem>>, vector<1x4x256xf32>
    %1 = vector.shape_cast %0 : vector<1x4x256xf32> to vector<4x256xf32>
    %c0_2 = arith.constant 0 : index
    %c0_3 = arith.constant 0 : index
    %2 = vector.load %arg2[%c0_2, %c0_3] : memref<32x4xf32, #tpu.memory_space<vmem>>, vector<32x4xf32>
    %cst = arith.constant 0.000000e+00 : f32
    %3 = vector.broadcast %cst : f32 to vector<32x256xf32>
    %c0_4 = arith.constant 0 : index
    %c0_5 = arith.constant 0 : index
    %4 = vector.load %arg3[%c0_4, %c0_5] : memref<32x1xf32, #tpu.memory_space<vmem>>, vector<32x1xf32>
    %5 = vector.broadcast %4 : vector<32x1xf32> to vector<32x256xf32>
    %6 = arith.addf %3, %5 : vector<32x256xf32>
    %7 = vector.extract_strided_slice %2 {offsets = [0, 0], sizes = [32, 1], strides = [1, 1]} : vector<32x4xf32> to vector<32x1xf32>
    %8 = vector.extract_strided_slice %1 {offsets = [0, 0], sizes = [1, 256], strides = [1, 1]} : vector<4x256xf32> to vector<1x256xf32>
    %9 = vector.broadcast %7 : vector<32x1xf32> to vector<32x256xf32>
    %10 = vector.broadcast %8 : vector<1x256xf32> to vector<32x256xf32>
    %11 = arith.mulf %9, %10 : vector<32x256xf32>
    %12 = arith.addf %6, %11 : vector<32x256xf32>
    %13 = vector.extract_strided_slice %2 {offsets = [0, 1], sizes = [32, 1], strides = [1, 1]} : vector<32x4xf32> to vector<32x1xf32>
    %14 = vector.extract_strided_slice %1 {offsets = [1, 0], sizes = [1, 256], strides = [1, 1]} : vector<4x256xf32> to vector<1x256xf32>
    %15 = vector.broadcast %13 : vector<32x1xf32> to vector<32x256xf32>
    %16 = vector.broadcast %14 : vector<1x256xf32> to vector<32x256xf32>
    %17 = arith.mulf %15, %16 : vector<32x256xf32>
    %18 = arith.addf %12, %17 : vector<32x256xf32>
    %19 = vector.extract_strided_slice %2 {offsets = [0, 2], sizes = [32, 1], strides = [1, 1]} : vector<32x4xf32> to vector<32x1xf32>
    %20 = vector.extract_strided_slice %1 {offsets = [2, 0], sizes = [1, 256], strides = [1, 1]} : vector<4x256xf32> to vector<1x256xf32>
    %21 = vector.broadcast %19 : vector<32x1xf32> to vector<32x256xf32>
    %22 = vector.broadcast %20 : vector<1x256xf32> to vector<32x256xf32>
    %23 = arith.mulf %21, %22 : vector<32x256xf32>
    %24 = arith.addf %18, %23 : vector<32x256xf32>
    %25 = vector.extract_strided_slice %2 {offsets = [0, 3], sizes = [32, 1], strides = [1, 1]} : vector<32x4xf32> to vector<32x1xf32>
    %26 = vector.extract_strided_slice %1 {offsets = [3, 0], sizes = [1, 256], strides = [1, 1]} : vector<4x256xf32> to vector<1x256xf32>
    %27 = vector.broadcast %25 : vector<32x1xf32> to vector<32x256xf32>
    %28 = vector.broadcast %26 : vector<1x256xf32> to vector<32x256xf32>
    %29 = arith.mulf %27, %28 : vector<32x256xf32>
    %30 = arith.addf %24, %29 : vector<32x256xf32>
    %31 = vector.shape_cast %30 : vector<32x256xf32> to vector<1x32x256xf32>
    %cst_6 = arith.constant dense<0.000000e+00> : vector<1xf32>
    %32 = vector.multi_reduction <add>, %31, %cst_6 [1, 2] : vector<1x32x256xf32> to vector<1xf32>
    %33 = vector.shape_cast %32 : vector<1xf32> to vector<1x1x1xf32>
    %34 = vector.extract %33[0, 0, 0] : f32 from vector<1x1x1xf32>
    %cst_7 = arith.constant 1.22070313E-4 : f32
    %35 = arith.mulf %34, %cst_7 : f32
    %36 = vector.broadcast %35 : f32 to vector<32x256xf32>
    %37 = arith.subf %30, %36 : vector<32x256xf32>
    %38 = arith.mulf %37, %37 : vector<32x256xf32>
    %39 = vector.shape_cast %38 : vector<32x256xf32> to vector<1x32x256xf32>
    %cst_8 = arith.constant dense<0.000000e+00> : vector<1xf32>
    %40 = vector.multi_reduction <add>, %39, %cst_8 [1, 2] : vector<1x32x256xf32> to vector<1xf32>
    %41 = vector.shape_cast %40 : vector<1xf32> to vector<1x1x1xf32>
    %42 = vector.extract %41[0, 0, 0] : f32 from vector<1x1x1xf32>
    %cst_9 = arith.constant 1.22070313E-4 : f32
    %43 = arith.mulf %42, %cst_9 : f32
    %cst_10 = arith.constant 9.99999974E-6 : f32
    %44 = arith.addf %43, %cst_10 : f32
    %45 = math.rsqrt %44 : f32
    %46 = vector.broadcast %45 : f32 to vector<32x256xf32>
    %47 = arith.mulf %37, %46 : vector<32x256xf32>
    %c0_11 = arith.constant 0 : index
    %c0_12 = arith.constant 0 : index
    %48 = vector.load %arg4[%c0_11, %c0_12] : memref<32x256xf32, #tpu.memory_space<vmem>>, vector<32x256xf32>
    %49 = arith.mulf %47, %48 : vector<32x256xf32>
    %c0_13 = arith.constant 0 : index
    %c0_14 = arith.constant 0 : index
    %50 = vector.load %arg5[%c0_13, %c0_14] : memref<32x256xf32, #tpu.memory_space<vmem>>, vector<32x256xf32>
    %51 = arith.addf %49, %50 : vector<32x256xf32>
    %cst_15 = arith.constant 0.000000e+00 : f32
    %52 = vector.broadcast %cst_15 : f32 to vector<32x256xf32>
    %53 = arith.maximumf %51, %52 : vector<32x256xf32>
    %c0_16 = arith.constant 0 : index
    %c0_17 = arith.constant 0 : index
    %c0_18 = arith.constant 0 : index
    %54 = vector.load %arg6[%c0_16, %c0_17, %c0_18] : memref<1x32x256xf32, #tpu.memory_space<vmem>>, vector<1x32x256xf32>
    %55 = vector.shape_cast %54 : vector<1x32x256xf32> to vector<32x256xf32>
    %56 = vector.shape_cast %53 : vector<32x256xf32> to vector<1x32x256xf32>
    tpu.vector_store %arg6[%c0_16, %c0_17, %c0_18], %56 {strides = array<i32>} : memref<1x32x256xf32, #tpu.memory_space<vmem>>, vector<1x32x256xf32>,
    return
  }
  func.func @transform_0(%arg0: i32) -> (i32, i32, i32) {
    %c0_i32 = arith.constant 0 : i32
    %c0_i32_0 = arith.constant 0 : i32
    %c0_i32_1 = arith.constant 0 : i32
    return %arg0, %c0_i32, %c0_i32_0 : i32, i32, i32
  }
  func.func @transform_1(%arg0: i32) -> (i32, i32) {
    %c0_i32 = arith.constant 0 : i32
    %c0_i32_0 = arith.constant 0 : i32
    %c0_i32_1 = arith.constant 0 : i32
    return %c0_i32, %c0_i32_0 : i32, i32
  }
  func.func @transform_2(%arg0: i32) -> (i32, i32) {
    %c0_i32 = arith.constant 0 : i32
    %c0_i32_0 = arith.constant 0 : i32
    %c0_i32_1 = arith.constant 0 : i32
    return %c0_i32, %c0_i32_0 : i32, i32
  }
  func.func @transform_3(%arg0: i32) -> (i32, i32) {
    %c0_i32 = arith.constant 0 : i32
    %c0_i32_0 = arith.constant 0 : i32
    %c0_i32_1 = arith.constant 0 : i32
    return %c0_i32, %c0_i32_0 : i32, i32
  }
  func.func @transform_4(%arg0: i32) -> (i32, i32) {
    %c0_i32 = arith.constant 0 : i32
    %c0_i32_0 = arith.constant 0 : i32
    %c0_i32_1 = arith.constant 0 : i32
    return %c0_i32, %c0_i32_0 : i32, i32
  }
  func.func @transform_5(%arg0: i32) -> (i32, i32, i32) {
    %c0_i32 = arith.constant 0 : i32
    %c0_i32_0 = arith.constant 0 : i32
    %c0_i32_1 = arith.constant 0 : i32
    return %arg0, %c0_i32, %c0_i32_0 : i32, i32, i32
  }
}

module attributes {stable_mosaic.version = 11 : i64} {
  func.func @_conv2_ln_relu_kernel(%arg0: i32, %arg1: memref<1x32x342xf32, #tpu.memory_space<vmem>>, %arg2: memref<9x8x32xf32, #tpu.memory_space<vmem>>, %arg3: memref<8x1xf32, #tpu.memory_space<vmem>>, %arg4: memref<1x288xf32, #tpu.memory_space<vmem>>, %arg5: memref<8x288xf32, #tpu.memory_space<vmem>>, %arg6: memref<8x288xf32, #tpu.memory_space<vmem>>, %arg7: memref<1x8x288xf32, #tpu.memory_space<vmem>>) attributes {dimension_semantics = [#tpu.dimension_semantics<parallel>], iteration_bounds = array<i64: 2>, scalar_prefetch = 0 : i64, scratch_operands = 0 : i64, tpu.core_type = #tpu.core_type<tc>, window_params = [{transform_indices = @transform_0, window_bounds = array<i64: 1, 32, 342>}, {pipeline_mode = #tpu.pipeline_mode<synchronous>, transform_indices = @transform_1, window_bounds = array<i64: 9, 8, 32>}, {pipeline_mode = #tpu.pipeline_mode<synchronous>, transform_indices = @transform_2, window_bounds = array<i64: 8, 1>}, {pipeline_mode = #tpu.pipeline_mode<synchronous>, transform_indices = @transform_3, window_bounds = array<i64: 1, 288>}, {pipeline_mode = #tpu.pipeline_mode<synchronous>, transform_indices = @transform_4, window_bounds = array<i64: 8, 288>}, {pipeline_mode = #tpu.pipeline_mode<synchronous>, transform_indices = @transform_5, window_bounds = array<i64: 8, 288>}, {transform_indices = @transform_6, window_bounds = array<i64: 1, 8, 288>}]} {
    %c0 = arith.constant 0 : index
    %c0_0 = arith.constant 0 : index
    %c0_1 = arith.constant 0 : index
    %0 = vector.load %arg1[%c0, %c0_0, %c0_1] : memref<1x32x342xf32, #tpu.memory_space<vmem>>, vector<1x32x342xf32>
    %1 = vector.shape_cast %0 : vector<1x32x342xf32> to vector<32x342xf32>
    %cst = arith.constant 0.000000e+00 : f32
    %2 = vector.broadcast %cst : f32 to vector<8x288xf32>
    %c0_2 = arith.constant 0 : index
    %c0_3 = arith.constant 0 : index
    %c0_4 = arith.constant 0 : index
    %3 = vector.load %arg2[%c0_2, %c0_3, %c0_4] : memref<9x8x32xf32, #tpu.memory_space<vmem>>, vector<1x8x32xf32>
    %4 = vector.shape_cast %3 : vector<1x8x32xf32> to vector<8x32xf32>
    %5 = vector.extract_strided_slice %1 {offsets = [0, 0], sizes = [32, 288], strides = [1, 1]} : vector<32x342xf32> to vector<32x288xf32>
    %cst_5 = arith.constant dense<0.000000e+00> : vector<8x288xf32>
    %6 = tpu.matmul %4, %5, %cst_5 {dimension_numbers = #tpu.dot_dimension_numbers<[1], [0], [0], [1], [0, 0, 1, 1], [], []>} : vector<8x32xf32>, vector<32x288xf32>, vector<8x288xf32> -> vector<8x288xf32>
    %7 = arith.addf %2, %6 : vector<8x288xf32>
    %c1 = arith.constant 1 : index
    %c0_6 = arith.constant 0 : index
    %c0_7 = arith.constant 0 : index
    %8 = vector.load %arg2[%c1, %c0_6, %c0_7] : memref<9x8x32xf32, #tpu.memory_space<vmem>>, vector<1x8x32xf32>
    %9 = vector.shape_cast %8 : vector<1x8x32xf32> to vector<8x32xf32>
    %10 = vector.extract_strided_slice %1 {offsets = [0, 1], sizes = [32, 288], strides = [1, 1]} : vector<32x342xf32> to vector<32x288xf32>
    %cst_8 = arith.constant dense<0.000000e+00> : vector<8x288xf32>
    %11 = tpu.matmul %9, %10, %cst_8 {dimension_numbers = #tpu.dot_dimension_numbers<[1], [0], [0], [1], [0, 0, 1, 1], [], []>} : vector<8x32xf32>, vector<32x288xf32>, vector<8x288xf32> -> vector<8x288xf32>
    %12 = arith.addf %7, %11 : vector<8x288xf32>
    %c2 = arith.constant 2 : index
    %c0_9 = arith.constant 0 : index
    %c0_10 = arith.constant 0 : index
    %13 = vector.load %arg2[%c2, %c0_9, %c0_10] : memref<9x8x32xf32, #tpu.memory_space<vmem>>, vector<1x8x32xf32>
    %14 = vector.shape_cast %13 : vector<1x8x32xf32> to vector<8x32xf32>
    %15 = vector.extract_strided_slice %1 {offsets = [0, 2], sizes = [32, 288], strides = [1, 1]} : vector<32x342xf32> to vector<32x288xf32>
    %cst_11 = arith.constant dense<0.000000e+00> : vector<8x288xf32>
    %16 = tpu.matmul %14, %15, %cst_11 {dimension_numbers = #tpu.dot_dimension_numbers<[1], [0], [0], [1], [0, 0, 1, 1], [], []>} : vector<8x32xf32>, vector<32x288xf32>, vector<8x288xf32> -> vector<8x288xf32>
    %17 = arith.addf %12, %16 : vector<8x288xf32>
    %c3 = arith.constant 3 : index
    %c0_12 = arith.constant 0 : index
    %c0_13 = arith.constant 0 : index
    %18 = vector.load %arg2[%c3, %c0_12, %c0_13] : memref<9x8x32xf32, #tpu.memory_space<vmem>>, vector<1x8x32xf32>
    %19 = vector.shape_cast %18 : vector<1x8x32xf32> to vector<8x32xf32>
    %20 = vector.extract_strided_slice %1 {offsets = [0, 18], sizes = [32, 288], strides = [1, 1]} : vector<32x342xf32> to vector<32x288xf32>
    %cst_14 = arith.constant dense<0.000000e+00> : vector<8x288xf32>
    %21 = tpu.matmul %19, %20, %cst_14 {dimension_numbers = #tpu.dot_dimension_numbers<[1], [0], [0], [1], [0, 0, 1, 1], [], []>} : vector<8x32xf32>, vector<32x288xf32>, vector<8x288xf32> -> vector<8x288xf32>
    %22 = arith.addf %17, %21 : vector<8x288xf32>
    %c4 = arith.constant 4 : index
    %c0_15 = arith.constant 0 : index
    %c0_16 = arith.constant 0 : index
    %23 = vector.load %arg2[%c4, %c0_15, %c0_16] : memref<9x8x32xf32, #tpu.memory_space<vmem>>, vector<1x8x32xf32>
    %24 = vector.shape_cast %23 : vector<1x8x32xf32> to vector<8x32xf32>
    %25 = vector.extract_strided_slice %1 {offsets = [0, 19], sizes = [32, 288], strides = [1, 1]} : vector<32x342xf32> to vector<32x288xf32>
    %cst_17 = arith.constant dense<0.000000e+00> : vector<8x288xf32>
    %26 = tpu.matmul %24, %25, %cst_17 {dimension_numbers = #tpu.dot_dimension_numbers<[1], [0], [0], [1], [0, 0, 1, 1], [], []>} : vector<8x32xf32>, vector<32x288xf32>, vector<8x288xf32> -> vector<8x288xf32>
    %27 = arith.addf %22, %26 : vector<8x288xf32>
    %c5 = arith.constant 5 : index
    %c0_18 = arith.constant 0 : index
    %c0_19 = arith.constant 0 : index
    %28 = vector.load %arg2[%c5, %c0_18, %c0_19] : memref<9x8x32xf32, #tpu.memory_space<vmem>>, vector<1x8x32xf32>
    %29 = vector.shape_cast %28 : vector<1x8x32xf32> to vector<8x32xf32>
    %30 = vector.extract_strided_slice %1 {offsets = [0, 20], sizes = [32, 288], strides = [1, 1]} : vector<32x342xf32> to vector<32x288xf32>
    %cst_20 = arith.constant dense<0.000000e+00> : vector<8x288xf32>
    %31 = tpu.matmul %29, %30, %cst_20 {dimension_numbers = #tpu.dot_dimension_numbers<[1], [0], [0], [1], [0, 0, 1, 1], [], []>} : vector<8x32xf32>, vector<32x288xf32>, vector<8x288xf32> -> vector<8x288xf32>
    %32 = arith.addf %27, %31 : vector<8x288xf32>
    %c6 = arith.constant 6 : index
    %c0_21 = arith.constant 0 : index
    %c0_22 = arith.constant 0 : index
    %33 = vector.load %arg2[%c6, %c0_21, %c0_22] : memref<9x8x32xf32, #tpu.memory_space<vmem>>, vector<1x8x32xf32>
    %34 = vector.shape_cast %33 : vector<1x8x32xf32> to vector<8x32xf32>
    %35 = vector.extract_strided_slice %1 {offsets = [0, 36], sizes = [32, 288], strides = [1, 1]} : vector<32x342xf32> to vector<32x288xf32>
    %cst_23 = arith.constant dense<0.000000e+00> : vector<8x288xf32>
    %36 = tpu.matmul %34, %35, %cst_23 {dimension_numbers = #tpu.dot_dimension_numbers<[1], [0], [0], [1], [0, 0, 1, 1], [], []>} : vector<8x32xf32>, vector<32x288xf32>, vector<8x288xf32> -> vector<8x288xf32>
    %37 = arith.addf %32, %36 : vector<8x288xf32>
    %c7 = arith.constant 7 : index
    %c0_24 = arith.constant 0 : index
    %c0_25 = arith.constant 0 : index
    %38 = vector.load %arg2[%c7, %c0_24, %c0_25] : memref<9x8x32xf32, #tpu.memory_space<vmem>>, vector<1x8x32xf32>
    %39 = vector.shape_cast %38 : vector<1x8x32xf32> to vector<8x32xf32>
    %40 = vector.extract_strided_slice %1 {offsets = [0, 37], sizes = [32, 288], strides = [1, 1]} : vector<32x342xf32> to vector<32x288xf32>
    %cst_26 = arith.constant dense<0.000000e+00> : vector<8x288xf32>
    %41 = tpu.matmul %39, %40, %cst_26 {dimension_numbers = #tpu.dot_dimension_numbers<[1], [0], [0], [1], [0, 0, 1, 1], [], []>} : vector<8x32xf32>, vector<32x288xf32>, vector<8x288xf32> -> vector<8x288xf32>
    %42 = arith.addf %37, %41 : vector<8x288xf32>
    %c8 = arith.constant 8 : index
    %c0_27 = arith.constant 0 : index
    %c0_28 = arith.constant 0 : index
    %43 = vector.load %arg2[%c8, %c0_27, %c0_28] : memref<9x8x32xf32, #tpu.memory_space<vmem>>, vector<1x8x32xf32>
    %44 = vector.shape_cast %43 : vector<1x8x32xf32> to vector<8x32xf32>
    %45 = vector.extract_strided_slice %1 {offsets = [0, 38], sizes = [32, 288], strides = [1, 1]} : vector<32x342xf32> to vector<32x288xf32>
    %cst_29 = arith.constant dense<0.000000e+00> : vector<8x288xf32>
    %46 = tpu.matmul %44, %45, %cst_29 {dimension_numbers = #tpu.dot_dimension_numbers<[1], [0], [0], [1], [0, 0, 1, 1], [], []>} : vector<8x32xf32>, vector<32x288xf32>, vector<8x288xf32> -> vector<8x288xf32>
    %47 = arith.addf %42, %46 : vector<8x288xf32>
    %c0_30 = arith.constant 0 : index
    %c0_31 = arith.constant 0 : index
    %48 = vector.load %arg3[%c0_30, %c0_31] : memref<8x1xf32, #tpu.memory_space<vmem>>, vector<8x1xf32>
    %49 = vector.broadcast %48 : vector<8x1xf32> to vector<8x288xf32>
    %50 = arith.addf %47, %49 : vector<8x288xf32>
    %c0_32 = arith.constant 0 : index
    %c0_33 = arith.constant 0 : index
    %51 = vector.load %arg4[%c0_32, %c0_33] : memref<1x288xf32, #tpu.memory_space<vmem>>, vector<1x288xf32>
    %52 = vector.broadcast %51 : vector<1x288xf32> to vector<8x288xf32>
    %53 = arith.mulf %50, %52 : vector<8x288xf32>
    %54 = vector.shape_cast %53 : vector<8x288xf32> to vector<1x8x288xf32>
    %cst_34 = arith.constant dense<0.000000e+00> : vector<1xf32>
    %55 = vector.multi_reduction <add>, %54, %cst_34 [1, 2] : vector<1x8x288xf32> to vector<1xf32>
    %56 = vector.shape_cast %55 : vector<1xf32> to vector<1x1x1xf32>
    %57 = vector.extract %56[0, 0, 0] : f32 from vector<1x1x1xf32>
    %cst_35 = arith.constant 4.8828125E-4 : f32
    %58 = arith.mulf %57, %cst_35 : f32
    %59 = vector.broadcast %58 : f32 to vector<8x288xf32>
    %60 = arith.subf %50, %59 : vector<8x288xf32>
    %61 = vector.broadcast %51 : vector<1x288xf32> to vector<8x288xf32>
    %62 = arith.mulf %60, %61 : vector<8x288xf32>
    %63 = arith.mulf %62, %62 : vector<8x288xf32>
    %64 = vector.shape_cast %63 : vector<8x288xf32> to vector<1x8x288xf32>
    %cst_36 = arith.constant dense<0.000000e+00> : vector<1xf32>
    %65 = vector.multi_reduction <add>, %64, %cst_36 [1, 2] : vector<1x8x288xf32> to vector<1xf32>
    %66 = vector.shape_cast %65 : vector<1xf32> to vector<1x1x1xf32>
    %67 = vector.extract %66[0, 0, 0] : f32 from vector<1x1x1xf32>
    %cst_37 = arith.constant 4.8828125E-4 : f32
    %68 = arith.mulf %67, %cst_37 : f32
    %cst_38 = arith.constant 9.99999974E-6 : f32
    %69 = arith.addf %68, %cst_38 : f32
    %70 = math.rsqrt %69 : f32
    %71 = vector.broadcast %58 : f32 to vector<8x288xf32>
    %72 = arith.subf %50, %71 : vector<8x288xf32>
    %73 = vector.broadcast %70 : f32 to vector<8x288xf32>
    %74 = arith.mulf %72, %73 : vector<8x288xf32>
    %c0_39 = arith.constant 0 : index
    %c0_40 = arith.constant 0 : index
    %75 = vector.load %arg5[%c0_39, %c0_40] : memref<8x288xf32, #tpu.memory_space<vmem>>, vector<8x288xf32>
    %76 = arith.mulf %74, %75 : vector<8x288xf32>
    %c0_41 = arith.constant 0 : index
    %c0_42 = arith.constant 0 : index
    %77 = vector.load %arg6[%c0_41, %c0_42] : memref<8x288xf32, #tpu.memory_space<vmem>>, vector<8x288xf32>
    %78 = arith.addf %76, %77 : vector<8x288xf32>
    %cst_43 = arith.constant 0.000000e+00 : f32
    %79 = vector.broadcast %cst_43 : f32 to vector<8x288xf32>
    %80 = arith.maximumf %78, %79 : vector<8x288xf32>
    %c0_44 = arith.constant 0 : index
    %c0_45 = arith.constant 0 : index
    %c0_46 = arith.constant 0 : index
    %81 = vector.load %arg7[%c0_44, %c0_45, %c0_46] : memref<1x8x288xf32, #tpu.memory_space<vmem>>, vector<1x8x288xf32>
    %82 = vector.shape_cast %81 : vector<1x8x288xf32> to vector<8x288xf32>
    %83 = vector.shape_cast %80 : vector<8x288xf32> to vector<1x8x288xf32>
    tpu.vector_store %arg7[%c0_44, %c0_45, %c0_46], %83 {strides = array<i32>} : memref<1x8x288xf32, #tpu.memory_space<vmem>>, vector<1x8x288xf32>,
    return
  }
  func.func @transform_0(%arg0: i32) -> (i32, i32, i32) {
    %c0_i32 = arith.constant 0 : i32
    %c0_i32_0 = arith.constant 0 : i32
    %c0_i32_1 = arith.constant 0 : i32
    return %arg0, %c0_i32, %c0_i32_0 : i32, i32, i32
  }
  func.func @transform_1(%arg0: i32) -> (i32, i32, i32) {
    %c0_i32 = arith.constant 0 : i32
    %c0_i32_0 = arith.constant 0 : i32
    %c0_i32_1 = arith.constant 0 : i32
    %c0_i32_2 = arith.constant 0 : i32
    return %c0_i32, %c0_i32_0, %c0_i32_1 : i32, i32, i32
  }
  func.func @transform_2(%arg0: i32) -> (i32, i32) {
    %c0_i32 = arith.constant 0 : i32
    %c0_i32_0 = arith.constant 0 : i32
    %c0_i32_1 = arith.constant 0 : i32
    return %c0_i32, %c0_i32_0 : i32, i32
  }
  func.func @transform_3(%arg0: i32) -> (i32, i32) {
    %c0_i32 = arith.constant 0 : i32
    %c0_i32_0 = arith.constant 0 : i32
    %c0_i32_1 = arith.constant 0 : i32
    return %c0_i32, %c0_i32_0 : i32, i32
  }
  func.func @transform_4(%arg0: i32) -> (i32, i32) {
    %c0_i32 = arith.constant 0 : i32
    %c0_i32_0 = arith.constant 0 : i32
    %c0_i32_1 = arith.constant 0 : i32
    return %c0_i32, %c0_i32_0 : i32, i32
  }
  func.func @transform_5(%arg0: i32) -> (i32, i32) {
    %c0_i32 = arith.constant 0 : i32
    %c0_i32_0 = arith.constant 0 : i32
    %c0_i32_1 = arith.constant 0 : i32
    return %c0_i32, %c0_i32_0 : i32, i32
  }
  func.func @transform_6(%arg0: i32) -> (i32, i32, i32) {
    %c0_i32 = arith.constant 0 : i32
    %c0_i32_0 = arith.constant 0 : i32
    %c0_i32_1 = arith.constant 0 : i32
    return %arg0, %c0_i32, %c0_i32_0 : i32, i32, i32
  }
}

</mosaic_0001>

<bundles_post_ra>
// kernel: dense_layer_forward.2
= control target key start
LH: loop header
LB: loop body
LE: loop exit
PB: predicated region body
PF: predicated region fallthrough
CT: control target
= control target key end

     0   :  { %s718_s18 = smov 0   ;;  %s869_s0 = inlined_call_operand.vmem [shape: f32[2,4,256], index: 0, kind: input, shape index: {}]   ;;  %s870_s1 = inlined_call_operand.vmem [shape: f32[32,4], index: 1, kind: input, shape index: {}]   ;;  %s871_s2 = inlined_call_operand.vmem [shape: f32[32,1], index: 2, kind: input, shape index: {}]   ;;  %s872_s3 = inlined_call_operand.vmem [shape: f32[32,256], index: 3, kind: input, shape index: {}]   ;;  %s873_s4 = inlined_call_operand.vmem [shape: f32[32,256], index: 4, kind: input, shape index: {}]   ;;  %s874_s5 = inlined_call_operand.vmem [shape: f32[2,32,256], index: 5, kind: output, shape index: {}]  }
   0x1 LB: > { %s630_s19 = sadd.s32 4294967295, %s682_s18   ;;  %p634_p0 = scmp.ge.s32.totalorder %s682_s18, 1  ;;  %s682_s18 = sphi %s718_s18, %s15_s18  }
   0x2   : > { %p187_p1 = scmp.lt.s32.totalorder %s682_s18, 3 }
   0x4   : > { %p188_p2 = pnand %p634_p0, %p187_p1 }
   0x5   : > { %p215_p3 = scmp.lt.s32.totalorder (!%p188_p2), %s630_s19, 1 }
   0x6   : > { %191 = sbr.rel (%p188_p2) target bundleno = 701 (0x2bd), region = 40 }
   0xb   : > { %v227_v0 = vld [vmem:[%s870_s1 + $0x8] sm:$0xff]  ;;  %v226_v1 = vld [vmem:[%s870_s1] sm:$0xff]  ;;  %v684_v2 = vmov 0   ;;  %v685_v4 = vmov 1   ;;  %v228_v6 = vld [vmem:[%s870_s1 + $0x10] sm:$0xff]  ;;  %v686_v7 = vmov 2   ;;  %v279_v16 = vlaneseq }
   0xc   : > { %662 = vset.pattern.permute.xlu1 %v684_v2  ;;  %661 = vset.pattern.permute.xlu0 %v684_v2  ;;  %v230_v3 = vld [vmem:[%s871_s2] sm:$0xff]  ;;  %v231_v5 = vld [vmem:[%s871_s2 + $0x8] sm:$0xff]  ;;  %v687_v8 = vmov 3   ;;  %v232_v9 = vld [vmem:[%s871_s2 + $0x10] sm:$0xff]  ;;  %s876_s19 = smov (!%p215_p3, %s630_s19), 1 }
   0xd   : > { %265 = vperm.xlu1 %662, %v227_v0   ;;  %260 = vperm.xlu0 %661, %v226_v1   ;;  %v229_v10 = vld [vmem:[%s870_s1 + $0x18] sm:$0xff]  ;;  %s641_s11 = sshll.u32 %s876_s19, 3  ;;  %v280_v19 = vshrl.u32 %v279_v16, 7  ;;  %s642_s26 = sshll.u32 %s876_s19, 6 }
   0xe   : > { %v233_v11 = vld [vmem:[%s871_s2 + $0x18] sm:$0xff]  ;;  %s219_s14 = scalar_lea.vmem %s869_s0, %s641_s11  ;;  %s224_s9 = scalar_lea.vmem %s874_s5, %s642_s26 }
   0xf   : > { %v281_v21 = vsub.s32 0, %v280_v19  ;;  %v285_v23 = vsub.s32 4, %v280_v19  ;;  %v225_v24 = vld [vmem:[%s219_s14] sm:$0xff]  ;;  %v331_v25 = vsub.s32 1, %v280_v19  ;;  %v335_v26 = vsub.s32 5, %v280_v19 }
  0x10   : > { %v381_v30 = vsub.s32 2, %v280_v19  ;;  %v385_v31 = vsub.s32 6, %v280_v19  ;;  %v431_v34 = vsub.s32 3, %v280_v19  ;;  %v435_v36 = vsub.s32 7, %v280_v19 }
  0x11   : > { %663 = vset.pattern.permute.xlu1 %v685_v4  ;;  %236 = vperm.xlu0 %661, %v230_v3   ;;  %v282_v28 = vrot.slane %v225_v24, %v281_v21  ;;  %v286_v29 = vrot.slane %v225_v24, %v285_v23  ;;  %v332_v32 = vrot.slane %v225_v24, %v331_v25 }
  0x12   : > { %314 = vperm.xlu1 %663, %v226_v1   ;;  %v336_v35 = vrot.slane %v225_v24, %v335_v26  ;;  %v382_v40 = vrot.slane %v225_v24, %v381_v30  ;;  %v386_v41 = vrot.slane %v225_v24, %v385_v31  ;;  %v432_v44 = vrot.slane %v225_v24, %v431_v34 }
  0x13   : > { %v766_v37 = vrot.slane %v282_v28, %v281_v21  ;;  %v768_v39 = vrot.slane %v286_v29, %v281_v21  ;;  %v342_v43 = vrot.slane %v332_v32, %v331_v25  ;;  %v436_v47 = vrot.slane %v225_v24, %v435_v36 }
  0x14   : > { %v772_v46 = vrot.slane %v336_v35, %v331_v25  ;;  %v774_v49 = vrot.slane %v382_v40, %v381_v30  ;;  %v776_v50 = vrot.slane %v386_v41, %v381_v30  ;;  %v778_v54 = vrot.slane %v432_v44, %v431_v34 }
  0x15   : > { %241 = vperm.xlu0 %661, %v231_v5   ;;  %v782_v58 = vrot.slane %v436_v47, %v431_v34 }
  0x16   : > { %318 = vperm.xlu1 %663, %v227_v0  }
  0x19   : > { %664 = vset.pattern.permute.xlu0 %v686_v7 }
  0x1a   : > { %665 = vset.pattern.permute.xlu1 %v684_v2  ;;  %364 = vperm.xlu0 %664, %v226_v1  }
  0x1b   : > { %270 = vperm.xlu1 %665, %v228_v6  }
  0x1e   : > { %372 = vperm.xlu0 %664, %v228_v6  }
  0x1f   : > { %666 = vset.pattern.permute.xlu1 %v686_v7 }
  0x20   : > { %368 = vperm.xlu1 %666, %v227_v0  }
  0x22   : > { %670 = vset.pattern.permute.xlu0 %v687_v8 }
  0x23   : > { %414 = vperm.xlu0 %670, %v226_v1  }
  0x24   : > { %667 = vset.pattern.permute.xlu1 %v684_v2 }
  0x25   : > { %246 = vperm.xlu1 %667, %v232_v9  }
  0x27   : > { %418 = vperm.xlu0 %670, %v227_v0  }
  0x29   : > { %668 = vset.pattern.permute.xlu1 %v685_v4 }
  0x2a   : > { %322 = vperm.xlu1 %668, %v228_v6  }
  0x2b   : > { %422 = vperm.xlu0 %670, %v228_v6  }
  0x2e   : > { %669 = vset.pattern.permute.xlu1 %v684_v2 }
  0x2f   : > { %275 = vperm.xlu1 %669, %v229_v10  }
  0x33   : > { %251 = vperm.xlu1 %669, %v233_v11  }
  0x37   : > { %671 = vset.pattern.permute.xlu1 %v685_v4 }
  0x38   : > { %326 = vperm.xlu1 %671, %v229_v10  }
  0x3c   : > { %672 = vset.pattern.permute.xlu1 %v686_v7 }
  0x3d   : > { %376 = vperm.xlu1 %672, %v229_v10  }
  0x41   : > { %673 = vset.pattern.permute.xlu1 %v687_v8 }
  0x42   : > { %426 = vperm.xlu1 %673, %v229_v10  }
  0x88   : > { %v266_v12 = vpop.permute.xlu1 %265  ;;  %v261_v13 = vpop.permute.xlu0 %260 }
  0x89   : > { %v297_v42 = vmul.f32 %v766_v37, %v261_v13  ;;  %v298_v45 = vmul.f32 %v768_v39, %v261_v13  ;;  %v299_v55 = vmul.f32 %v766_v37, %v266_v12  ;;  %v300_v6 = vmul.f32 %v768_v39, %v266_v12 }
  0x8c   : > { %v237_v14 = vpop.permute.xlu0 %236 }
  0x8d   : > { %v315_v15 = vpop.permute.xlu1 %314  ;;  %v305_v52 = vadd.f32 %v297_v42, %v237_v14  ;;  %v306_v56 = vadd.f32 %v298_v45, %v237_v14 }
  0x8e   : > { %v347_v53 = vmul.f32 %v342_v43, %v315_v15  ;;  %v348_v57 = vmul.f32 %v772_v46, %v315_v15 }
  0x90   : > { %v242_v18 = vpop.permute.xlu0 %241  ;;  %v355_v63 = vadd.f32 %v347_v53, %v305_v52  ;;  %v356_v2 = vadd.f32 %v348_v57, %v306_v56 }
  0x91   : > { %v756_v17 = vpop.permute.xlu1 %318  ;;  %v307_v59 = vadd.f32 %v299_v55, %v242_v18  ;;  %v308_v14 = vadd.f32 %v300_v6, %v242_v18 }
  0x92   : > { %v349_v60 = vmul.f32 %v342_v43, %v756_v17  ;;  %v350_v19 = vmul.f32 %v772_v46, %v756_v17 }
  0x94   : > { %v357_v9 = vadd.f32 %v349_v60, %v307_v59  ;;  %v358_v30 = vadd.f32 %v350_v19, %v308_v14 }
  0x95   : > { %v365_v22 = vpop.permute.xlu0 %364 }
  0x96   : > { %v762_v20 = vpop.permute.xlu1 %270  ;;  %v397_v61 = vmul.f32 %v774_v49, %v365_v22  ;;  %v398_v62 = vmul.f32 %v776_v50, %v365_v22 }
  0x97   : > { %v301_v7 = vmul.f32 %v766_v37, %v762_v20  ;;  %v302_v25 = vmul.f32 %v768_v39, %v762_v20 }
  0x98   : > { %v405_v10 = vadd.f32 %v397_v61, %v355_v63  ;;  %v406_v11 = vadd.f32 %v398_v62, %v356_v2 }
  0x99   : > { %v764_v33 = vpop.permute.xlu0 %372 }
  0x9a   : > { %v401_v12 = vmul.f32 %v774_v49, %v764_v33  ;;  %v402_v40 = vmul.f32 %v776_v50, %v764_v33 }
  0x9b   : > { %v369_v27 = vpop.permute.xlu1 %368 }
  0x9c   : > { %v399_v3 = vmul.f32 %v774_v49, %v369_v27  ;;  %v400_v26 = vmul.f32 %v776_v50, %v369_v27 }
  0x9e   : > { %v415_v48 = vpop.permute.xlu0 %414  ;;  %v407_v21 = vadd.f32 %v399_v3, %v357_v9  ;;  %v408_v41 = vadd.f32 %v400_v26, %v358_v30 }
  0x9f   : > { %v447_v4 = vmul.f32 %v778_v54, %v415_v48  ;;  %v448_v5 = vmul.f32 %v782_v58, %v415_v48 }
  0xa0   : > { %v247_v38 = vpop.permute.xlu1 %246 }
  0xa1   : > { %v309_v15 = vadd.f32 %v301_v7, %v247_v38  ;;  %v455_v22 = vadd.f32 %v447_v4, %v405_v10  ;;  %v456_v23 = vadd.f32 %v448_v5, %v406_v11  ;;  %v310_v32 = vadd.f32 %v302_v25, %v247_v38 }
  0xa2   : > { %v419_v0 = vpop.permute.xlu0 %418 }
  0xa3   : > { %v449_v13 = vmul.f32 %v778_v54, %v419_v0  ;;  %v463_v31 = vadd.f32 %v456_v23, %v455_v22  ;;  %v450_v17 = vmul.f32 %v782_v58, %v419_v0 }
  0xa5   : > { %v323_v51 = vpop.permute.xlu1 %322  ;;  %v457_v28 = vadd.f32 %v449_v13, %v407_v21  ;;  %v458_v27 = vadd.f32 %v450_v17, %v408_v41 }
  0xa6   : > { %v351_v8 = vmul.f32 %v342_v43, %v323_v51  ;;  %v352_v18 = vmul.f32 %v772_v46, %v323_v51  ;;  %v423_v29 = vpop.permute.xlu0 %422 }
  0xa7   : > { %v451_v36 = vmul.f32 %v778_v54, %v423_v29  ;;  %v464_v20 = vadd.f32 %v463_v31, %v457_v28  ;;  %v452_v52 = vmul.f32 %v782_v58, %v423_v29 }
  0xa8   : > { %v359_v24 = vadd.f32 %v351_v8, %v309_v15  ;;  %v360_v42 = vadd.f32 %v352_v18, %v310_v32 }
  0xa9   : > { %v465_v51 = vadd.f32 %v464_v20, %v458_v27 }
  0xaa   : > { %v276_v1 = vpop.permute.xlu1 %275  ;;  %v409_v35 = vadd.f32 %v401_v12, %v359_v24  ;;  %v410_v38 = vadd.f32 %v402_v40, %v360_v42 }
  0xab   : > { %v303_v45 = vmul.f32 %v766_v37, %v276_v1  ;;  %v304_v53 = vmul.f32 %v768_v39, %v276_v1 }
  0xac   : > { %v459_v44 = vadd.f32 %v451_v36, %v409_v35  ;;  %v460_v62 = vadd.f32 %v452_v52, %v410_v38  ;;  %v529_v38 = vld [vmem:[%s872_s3 + $0x10] sm:$0xff]  ;;  %v530_v52 = vld [vmem:[%s872_s3 + $0x18] sm:$0xff] }
  0xae   : > { %v252_v16 = vpop.permute.xlu1 %251  ;;  %v466_v57 = vadd.f32 %v465_v51, %v459_v44  ;;  %v528_v51 = vld [vmem:[%s872_s3 + $0x8] sm:$0xff] }
  0xaf   : > { %v311_v55 = vadd.f32 %v303_v45, %v252_v16  ;;  %v312_v59 = vadd.f32 %v304_v53, %v252_v16 }
  0xb0   : > { %v467_v1 = vadd.f32 %v466_v57, %v460_v62 }
  0xb3   : > { %v327_v34 = vpop.permute.xlu1 %326 }
  0xb4   : > { %v353_v47 = vmul.f32 %v342_v43, %v327_v34  ;;  %v354_v56 = vmul.f32 %v772_v46, %v327_v34 }
  0xb6   : > { %v361_v60 = vadd.f32 %v353_v47, %v311_v55  ;;  %v362_v43 = vadd.f32 %v354_v56, %v312_v59  ;;  %v531_v55 = vld [vmem:[%s872_s3 + $0x20] sm:$0xff]  ;;  %v532_v56 = vld [vmem:[%s872_s3 + $0x28] sm:$0xff] }
  0xb8   : > { %v377_v48 = vpop.permute.xlu1 %376 }
  0xb9   : > { %v403_v33 = vmul.f32 %v774_v49, %v377_v48  ;;  %v404_v61 = vmul.f32 %v776_v50, %v377_v48  ;;  %v527_v48 = vld [vmem:[%s872_s3] sm:$0xff] }
  0xbb   : > { %v411_v63 = vadd.f32 %v403_v33, %v361_v60  ;;  %v412_v3 = vadd.f32 %v404_v61, %v362_v43  ;;  %v533_v33 = vld [vmem:[%s872_s3 + $0x30] sm:$0xff]  ;;  %v544_v43 = vld [vmem:[%s873_s4 + $0x8] sm:$0xff] }
  0xbd   : > { %v427_v37 = vpop.permute.xlu1 %426 }
  0xbe   : > { %v453_v0 = vmul.f32 %v778_v54, %v427_v37  ;;  %v454_v2 = vmul.f32 %v782_v58, %v427_v37  ;;  %v543_v37 = vld [vmem:[%s873_s4] sm:$0xff] }
  0xc0   : > { %v461_v39 = vadd.f32 %v453_v0, %v411_v63  ;;  %v462_v4 = vadd.f32 %v454_v2, %v412_v3 }
  0xc2   : > { %v468_v46 = vadd.f32 %v467_v1, %v461_v39  ;;  %v546_v1 = vld [vmem:[%s873_s4 + $0x18] sm:$0xff] }
  0xc4   : > { %v469_v5 = vadd.f32 %v468_v46, %v462_v4 }
  0xc6   : > { %470 = vadd.xlane.f32.xlu0 %v469_v5 }
 0x14f   : > { %v471_v49 = vpop.xlane.xlu0 %470 }
 0x150   : > { %v472_v6 = vrot.slane %v471_v49, 4 }
 0x152   : > { %v473_v7 = vadd.f32 %v472_v6, %v471_v49 }
 0x154   : > { %v474_v8 = vrot.slane %v473_v7, 2 }
 0x156   : > { %v475_v50 = vadd.f32 %v474_v8, %v473_v7  ;;  %v548_v7 = vld [vmem:[%s873_s4 + $0x28] sm:$0xff]  ;;  %v549_v8 = vld [vmem:[%s873_s4 + $0x30] sm:$0xff] }
 0x158   : > { %v476_v9 = vrot.slane %v475_v50, 1 }
 0x15a   : > { %v477_v10 = vadd.f32 %v476_v9, %v475_v50  ;;  %v550_v50 = vld [vmem:[%s873_s4 + $0x38] sm:$0xff] }
 0x15c   : > { %643 = vpush %v477_v10 }
 0x18d   : > { %s644_s15 = spop %643 }
 0x18e   : > { %s479_s16 = smul.f32 0.00012207031, %s644_s15 }
 0x190   : > { %v480_v54 = vstv %s479_s16 }
 0x191   : > { %v481_v11 = vsub.f32 %v455_v22, %v480_v54  ;;  %v482_v58 = vsub.f32 %v456_v23, %v480_v54  ;;  %v483_v13 = vsub.f32 %v457_v28, %v480_v54  ;;  %v484_v14 = vsub.f32 %v458_v27, %v480_v54 }
 0x192   : > { %v485_v19 = vsub.f32 %v459_v44, %v480_v54  ;;  %v486_v24 = vsub.f32 %v460_v62, %v480_v54  ;;  %v487_v18 = vsub.f32 %v461_v39, %v480_v54  ;;  %v488_v31 = vsub.f32 %v462_v4, %v480_v54  ;;  %v534_v62 = vld [vmem:[%s872_s3 + $0x38] sm:$0xff]  ;;  %v545_v39 = vld [vmem:[%s873_s4 + $0x10] sm:$0xff]  ;;  %v547_v4 = vld [vmem:[%s873_s4 + $0x20] sm:$0xff] }
 0x193   : > { %v489_v15 = vmul.f32 %v481_v11, %v481_v11  ;;  %v490_v16 = vmul.f32 %v482_v58, %v482_v58  ;;  %v491_v21 = vmul.f32 %v483_v13, %v483_v13  ;;  %v492_v25 = vmul.f32 %v484_v14, %v484_v14 }
 0x194   : > { %v493_v29 = vmul.f32 %v485_v19, %v485_v19  ;;  %v494_v32 = vmul.f32 %v486_v24, %v486_v24  ;;  %v495_v34 = vmul.f32 %v487_v18, %v487_v18  ;;  %v496_v22 = vmul.f32 %v488_v31, %v488_v31 }
 0x195   : > { %v497_v12 = vadd.f32 %v490_v16, %v489_v15 }
 0x197   : > { %v498_v26 = vadd.f32 %v497_v12, %v491_v21 }
 0x199   : > { %v499_v30 = vadd.f32 %v498_v26, %v492_v25 }
 0x19b   : > { %v500_v17 = vadd.f32 %v499_v30, %v493_v29 }
 0x19d   : > { %v501_v35 = vadd.f32 %v500_v17, %v494_v32 }
 0x19f   : > { %v502_v23 = vadd.f32 %v501_v35, %v495_v34 }
 0x1a1   : > { %v503_v28 = vadd.f32 %v502_v23, %v496_v22 }
 0x1a3   : > { %504 = vadd.xlane.f32.xlu1 %v503_v28 }
 0x22c   : > { %v505_v36 = vpop.xlane.xlu1 %504 }
 0x22d   : > { %v506_v40 = vrot.slane %v505_v36, 4 }
 0x22f   : > { %v507_v41 = vadd.f32 %v506_v40, %v505_v36 }
 0x231   : > { %v508_v20 = vrot.slane %v507_v41, 2 }
 0x233   : > { %v509_v42 = vadd.f32 %v508_v20, %v507_v41 }
 0x235   : > { %v510_v27 = vrot.slane %v509_v42, 1 }
 0x237   : > { %v511_v44 = vadd.f32 %v510_v27, %v509_v42 }
 0x239   : > { %645 = vpush %v511_v44 }
 0x26a   : > { %s646_s17 = spop %645 }
 0x26b   : > { %s513_s20 = smul.f32 0.00012207031, %s646_s17 }
 0x26d   : > { %s514_s21 = sadd.f32 1e-05, %s513_s20 }
 0x26f   : > { %v515_v45 = vstv %s514_s21 }
 0x270   : > { %674 = vrsqrt.f32 %v515_v45 }
 0x27d   : > { %v675_v47 = vpop.eup %674 }
 0x27e   : > { %647 = vpush %v675_v47 }
 0x2af   : > { %s648_s24 = spop %647 }
 0x2b0   : > { %v518_v53 = vstv %s648_s24 }
 0x2b1   : > { %v519_v57 = vmul.f32 %v518_v53, %v481_v11  ;;  %v520_v59 = vmul.f32 %v518_v53, %v482_v58  ;;  %v521_v60 = vmul.f32 %v518_v53, %v483_v13  ;;  %v522_v61 = vmul.f32 %v518_v53, %v484_v14 }
 0x2b2   : > { %v523_v63 = vmul.f32 %v518_v53, %v485_v19  ;;  %v524_v0 = vmul.f32 %v518_v53, %v486_v24  ;;  %v525_v2 = vmul.f32 %v518_v53, %v487_v18  ;;  %v526_v3 = vmul.f32 %v518_v53, %v488_v31 }
 0x2b3   : > { %v535_v46 = vmul.f32 %v527_v48, %v519_v57  ;;  %v536_v5 = vmul.f32 %v528_v51, %v520_v59  ;;  %v537_v49 = vmul.f32 %v529_v38, %v521_v60  ;;  %v538_v6 = vmul.f32 %v530_v52, %v522_v61 }
 0x2b4   : > { %v539_v9 = vmul.f32 %v531_v55, %v523_v63  ;;  %v540_v10 = vmul.f32 %v532_v56, %v524_v0  ;;  %v541_v54 = vmul.f32 %v533_v33, %v525_v2  ;;  %v542_v11 = vmul.f32 %v534_v62, %v526_v3 }
 0x2b5   : > { %v551_v58 = vadd.f32 %v543_v37, %v535_v46  ;;  %v552_v13 = vadd.f32 %v544_v43, %v536_v5  ;;  %v553_v14 = vadd.f32 %v545_v39, %v537_v49  ;;  %v554_v15 = vadd.f32 %v546_v1, %v538_v6 }
 0x2b6   : > { %v555_v16 = vadd.f32 %v547_v4, %v539_v9  ;;  %v556_v19 = vadd.f32 %v548_v7, %v540_v10  ;;  %v557_v21 = vadd.f32 %v549_v8, %v541_v54  ;;  %v558_v12 = vadd.f32 %v550_v50, %v542_v11 }
 0x2b7   : > { %v559_v24 = vmax.f32 %v551_v58, 0.0  ;;  %v560_v25 = vmax.f32 %v552_v13, 0.0  ;;  %v561_v26 = vmax.f32 %v553_v14, 0.0  ;;  %v562_v18 = vmax.f32 %v554_v15, 0.0 }
 0x2b8   : > { %v563_v29 = vmax.f32 %v555_v16, 0.0  ;;  %v564_v30 = vmax.f32 %v556_v19, 0.0  ;;  %v565_v31 = vmax.f32 %v557_v21, 0.0  ;;  %v566_v32 = vmax.f32 %v558_v12, 0.0 }
 0x2b9   : > { %567 = vst [vmem:[%s224_s9] sm:$0xff] %v559_v24  ;;  %568 = vst [vmem:[%s224_s9 + $0x8] sm:$0xff] %v560_v25 }
 0x2ba   : > { %569 = vst [vmem:[%s224_s9 + $0x10] sm:$0xff] %v561_v26  ;;  %570 = vst [vmem:[%s224_s9 + $0x18] sm:$0xff] %v562_v18 }
 0x2bb   : > { %571 = vst [vmem:[%s224_s9 + $0x20] sm:$0xff] %v563_v29  ;;  %572 = vst [vmem:[%s224_s9 + $0x28] sm:$0xff] %v564_v30 }
 0x2bc   : > { %573 = vst [vmem:[%s224_s9 + $0x30] sm:$0xff] %v565_v31  ;;  %574 = vst [vmem:[%s224_s9 + $0x38] sm:$0xff] %v566_v32 }
 0x2bd PF: > { %s15_s18 = sadd.s32 1, %s682_s18  }
 0x2be   : > { %p12_p4 = scmp.ge.s32.totalorder %s15_s18, 4  }
 0x2c0   :  { %14 = sbr.rel (!%p12_p4) target bundleno = 1 (0x1), region = 70 }

// kernel: dense_layer_forward.3
= control target key start
LH: loop header
LB: loop body
LE: loop exit
PB: predicated region body
PF: predicated region fallthrough
CT: control target
= control target key end

     0   :  { %s2380_s21 = smov 0   ;;  %s2768_s0 = inlined_call_operand.vmem [shape: f32[2,32,342], index: 0, kind: input, shape index: {}]   ;;  %s2769_s1 = inlined_call_operand.vmem [shape: f32[9,8,32], index: 1, kind: input, shape index: {}]   ;;  %s2770_s2 = inlined_call_operand.vmem [shape: f32[8,1], index: 2, kind: input, shape index: {}]   ;;  %s2771_s3 = inlined_call_operand.vmem [shape: f32[1,288], index: 3, kind: input, shape index: {}]   ;;  %s2772_s4 = inlined_call_operand.vmem [shape: f32[8,288], index: 4, kind: input, shape index: {}]   ;;  %s2773_s5 = inlined_call_operand.vmem [shape: f32[8,288], index: 5, kind: input, shape index: {}]   ;;  %s2774_s6 = inlined_call_operand.vmem [shape: f32[2,8,288], index: 6, kind: output, shape index: {}]  }
   0x1 LB: > { %s2117_s22 = sadd.s32 4294967295, %s2332_s21   ;;  %p2121_p0 = scmp.ge.s32.totalorder %s2332_s21, 1  ;;  %s2332_s21 = sphi %s2380_s21, %s16_s21  }
   0x2   : > { %p212_p1 = scmp.lt.s32.totalorder %s2332_s21, 3 }
   0x4   : > { %p213_p2 = pnand %p2121_p0, %p212_p1 }
   0x5   : > { %p242_p3 = scmp.lt.s32.totalorder (!%p213_p2), %s2117_s22, 1  ;;  %s2335_s27 = smov (!%p213_p2), 127  }
   0x6   : > { %216 = sbr.rel (%p213_p2) target bundleno = 1026 (0x402), region = 44  ;;  %s2337_s28 = smov (!%p213_p2), 126  }
   0x7   : > { %s2338_s29 = smov (!%p213_p2), 110   ;;  %s2339_s30 = smov (!%p213_p2), 109  }
   0x8   : > { %s2340_s7 = smov (!%p213_p2), 108   ;;  %s2341_s8 = smov (!%p213_p2), 92  }
   0x9   : > { %s2342_s13 = smov (!%p213_p2), 91   ;;  %s2343_s16 = smov (!%p213_p2), 90  }
   0xb   : > { %v2334_v0 = vmov 0.0   ;;  %s2776_s22 = smov (!%p242_p3, %s2117_s22), 1  ;;  %vm2336_vm0 = vmmov 0   ;;  %vm303_vm1 = vcmask 1039360   ;;  %v2124_v33 = vld [vmem:[%s2769_s1 + $0x8] sm:$0xff]  ;;  %vm324_vm2 = vcmask 261120  }
   0xc   : > { %2197 = vmatprep.subr.mxu1 %v2334_v0  ;;  %392 = vmatprep.mubr.f32.mxu0 %v2334_v0  ;;  %s2296_s23 = smul.u32 96, %s2776_s22  ;;  %v264_v38 = vld [vmem:[%s2769_s1] sm:$0xff]  ;;  %vm639_vm3 = vcmask 1031168   ;;  %v2129_v55 = vld [vmem:[%s2769_s1 + $0x10] sm:$0xff]  ;;  %vm833_vm4 = vcmask 900096   ;;  %vm1027_vm5 = vcmask 891904  }
   0xd   : > { %2205 = vmatprep.mubr.msk.f32.mxu1 %vm2336_vm0, %v2334_v0  ;;  %vm1221_vm6 = vcmask 883712   ;;  %vm1415_vm7 = vcmask 752640   ;;  %vm1609_vm8 = vcmask 744448   ;;  %vm1803_vm9 = vcmask 736256   ;;  %s2297_s25 = smul.u32 24, %s2776_s22 }
   0xe   : > { %s246_s26 = scalar_lea.vmem %s2768_s0, %s2296_s23 }
   0xf   : > { %v2396_v1 = vld [vmem:[%s246_s26 + $0x50] sm:$0xff]  ;;  %v2398_v2 = vld [vmem:[%s246_s26 + $0x48] sm:$0xff]  ;;  %v2402_v3 = vld [vmem:[%s246_s26 + $0x58] sm:$0xff]  ;;  %s251_s9 = scalar_lea.vmem %s2774_s6, %s2297_s25 }
  0x10   : > { %299 = vrot.lane.b32.xlu0 %v2396_v1, %s2335_s27  ;;  %297 = vrot.lane.b32.xlu1 %v2398_v2, %s2335_s27  ;;  %v2404_v4 = vld [vmem:[%s246_s26 + $0x38] sm:$0xff]  ;;  %v2408_v5 = vld [vmem:[%s246_s26 + $0x40] sm:$0xff] }
  0x11   : > { %v2410_v6 = vld [vmem:[%s246_s26 + $0x30] sm:$0xff]  ;;  %v2414_v7 = vld [vmem:[%s246_s26 + $0x28] sm:$0xff]  ;;  %v2416_v8 = vld [vmem:[%s246_s26 + $0x20] sm:$0xff] }
  0x12   : > { %v2422_v9 = vld [vmem:[%s246_s26 + $0x18] sm:$0xff]  ;;  %v2424_v10 = vld [vmem:[%s246_s26 + $0x8] sm:$0xff]  ;;  %v2428_v11 = vld [vmem:[%s246_s26 + $0x10] sm:$0xff] }
  0x13   : > { %v2430_v12 = vld [vmem:[%s246_s26] sm:$0xff] }
  0x14   : > { %301 = vrot.lane.b32.xlu0 %v2402_v3, %s2335_s27  ;;  %293 = vrot.lane.b32.xlu1 %v2404_v4, %s2335_s27 }
  0x18   : > { %295 = vrot.lane.b32.xlu0 %v2408_v5, %s2335_s27  ;;  %291 = vrot.lane.b32.xlu1 %v2410_v6, %s2335_s27 }
  0x1c   : > { %289 = vrot.lane.b32.xlu1 %v2414_v7, %s2335_s27  ;;  %287 = vrot.lane.b32.xlu0 %v2416_v8, %s2335_s27 }
  0x20   : > { %285 = vrot.lane.b32.xlu0 %v2422_v9, %s2335_s27  ;;  %281 = vrot.lane.b32.xlu1 %v2424_v10, %s2335_s27 }
  0x24   : > { %283 = vrot.lane.b32.xlu0 %v2428_v11, %s2335_s27  ;;  %279 = vrot.lane.b32.xlu1 %v2430_v12, %s2335_s27 }
  0x28   : > { %635 = vrot.lane.b32.xlu0 %v2396_v1, %s2337_s28  ;;  %637 = vrot.lane.b32.xlu1 %v2402_v3, %s2337_s28 }
  0x2c   : > { %633 = vrot.lane.b32.xlu0 %v2398_v2, %s2337_s28  ;;  %629 = vrot.lane.b32.xlu1 %v2404_v4, %s2337_s28 }
  0x30   : > { %631 = vrot.lane.b32.xlu0 %v2408_v5, %s2337_s28  ;;  %627 = vrot.lane.b32.xlu1 %v2410_v6, %s2337_s28 }
  0x34   : > { %623 = vrot.lane.b32.xlu0 %v2416_v8, %s2337_s28  ;;  %625 = vrot.lane.b32.xlu1 %v2414_v7, %s2337_s28 }
  0x38   : > { %621 = vrot.lane.b32.xlu0 %v2422_v9, %s2337_s28  ;;  %617 = vrot.lane.b32.xlu1 %v2424_v10, %s2337_s28 }
  0x3c   : > { %619 = vrot.lane.b32.xlu0 %v2428_v11, %s2337_s28  ;;  %615 = vrot.lane.b32.xlu1 %v2430_v12, %s2337_s28 }
  0x40   : > { %829 = vrot.lane.b32.xlu0 %v2396_v1, %s2338_s29  ;;  %831 = vrot.lane.b32.xlu1 %v2402_v3, %s2338_s29 }
  0x44   : > { %827 = vrot.lane.b32.xlu0 %v2398_v2, %s2338_s29  ;;  %823 = vrot.lane.b32.xlu1 %v2404_v4, %s2338_s29 }
  0x48   : > { %825 = vrot.lane.b32.xlu0 %v2408_v5, %s2338_s29  ;;  %821 = vrot.lane.b32.xlu1 %v2410_v6, %s2338_s29 }
  0x4c   : > { %817 = vrot.lane.b32.xlu0 %v2416_v8, %s2338_s29  ;;  %819 = vrot.lane.b32.xlu1 %v2414_v7, %s2338_s29 }
  0x50   : > { %815 = vrot.lane.b32.xlu0 %v2422_v9, %s2338_s29  ;;  %811 = vrot.lane.b32.xlu1 %v2424_v10, %s2338_s29 }
  0x54   : > { %813 = vrot.lane.b32.xlu0 %v2428_v11, %s2338_s29  ;;  %809 = vrot.lane.b32.xlu1 %v2430_v12, %s2338_s29 }
  0x58   : > { %1023 = vrot.lane.b32.xlu0 %v2396_v1, %s2339_s30  ;;  %1025 = vrot.lane.b32.xlu1 %v2402_v3, %s2339_s30 }
  0x5c   : > { %1021 = vrot.lane.b32.xlu0 %v2398_v2, %s2339_s30  ;;  %1017 = vrot.lane.b32.xlu1 %v2404_v4, %s2339_s30 }
  0x60   : > { %1019 = vrot.lane.b32.xlu0 %v2408_v5, %s2339_s30  ;;  %1015 = vrot.lane.b32.xlu1 %v2410_v6, %s2339_s30 }
  0x64   : > { %1011 = vrot.lane.b32.xlu0 %v2416_v8, %s2339_s30  ;;  %1013 = vrot.lane.b32.xlu1 %v2414_v7, %s2339_s30 }
  0x68   : > { %1009 = vrot.lane.b32.xlu0 %v2422_v9, %s2339_s30  ;;  %1005 = vrot.lane.b32.xlu1 %v2424_v10, %s2339_s30 }
  0x6c   : > { %1007 = vrot.lane.b32.xlu0 %v2428_v11, %s2339_s30  ;;  %1003 = vrot.lane.b32.xlu1 %v2430_v12, %s2339_s30 }
  0x70   : > { %1217 = vrot.lane.b32.xlu0 %v2396_v1, %s2340_s7  ;;  %1219 = vrot.lane.b32.xlu1 %v2402_v3, %s2340_s7 }
  0x74   : > { %1215 = vrot.lane.b32.xlu0 %v2398_v2, %s2340_s7  ;;  %1211 = vrot.lane.b32.xlu1 %v2404_v4, %s2340_s7 }
  0x78   : > { %1213 = vrot.lane.b32.xlu0 %v2408_v5, %s2340_s7  ;;  %1209 = vrot.lane.b32.xlu1 %v2410_v6, %s2340_s7 }
  0x7c   : > { %1205 = vrot.lane.b32.xlu0 %v2416_v8, %s2340_s7  ;;  %1207 = vrot.lane.b32.xlu1 %v2414_v7, %s2340_s7 }
  0x80   : > { %1203 = vrot.lane.b32.xlu0 %v2422_v9, %s2340_s7  ;;  %1199 = vrot.lane.b32.xlu1 %v2424_v10, %s2340_s7 }
  0x82   : > { %v300_v13 = vpop.permute.xlu0 %299  ;;  %v298_v14 = vpop.permute.xlu1 %297 }
  0x83   : > { %v310_v18 = vsel %vm303_vm1, %v298_v14, %v300_v13 }
  0x84   : > { %1201 = vrot.lane.b32.xlu0 %v2428_v11, %s2340_s7  ;;  %1197 = vrot.lane.b32.xlu1 %v2430_v12, %s2340_s7 }
  0x86   : > { %v302_v15 = vpop.permute.xlu0 %301  ;;  %v294_v16 = vpop.permute.xlu1 %293 }
  0x87   : > { %2198 = vmatpush3.msra.mxu1 %v302_v15  ;;  %v311_v17 = vsel %vm303_vm1, %v300_v13, %v302_v15 }
  0x88   : > { %352 = vmatprep.subr.mxu0 %v311_v17  ;;  %1411 = vrot.lane.b32.xlu0 %v2396_v1, %s2341_s8 }
  0x89   : > { %1413 = vrot.lane.b32.xlu1 %v2402_v3, %s2341_s8  ;;  %353 = vmatpush1.msra.mxu0 %v310_v18 }
  0x8a   : > { %2199 = vmatprep.subr.mxu1 %v2334_v0  ;;  %v296_v19 = vpop.permute.xlu0 %295  ;;  %v292_v20 = vpop.permute.xlu1 %291 }
  0x8b   : > { %2200 = vmatpush3.msra.mxu1 %v296_v19  ;;  %v309_v21 = vsel %vm303_vm1, %v294_v16, %v296_v19  ;;  %v308_v22 = vsel %vm303_vm1, %v292_v20, %v294_v16 }
  0x8c   : > { %354 = vmatprep.subr.mxu0 %v309_v21  ;;  %1409 = vrot.lane.b32.xlu0 %v2398_v2, %s2341_s8 }
  0x8d   : > { %1405 = vrot.lane.b32.xlu1 %v2404_v4, %s2341_s8  ;;  %355 = vmatpush1.msra.mxu0 %v308_v22 }
  0x8e   : > { %v290_v23 = vpop.permute.xlu1 %289  ;;  %v288_v24 = vpop.permute.xlu0 %287  ;;  %2201 = vmatprep.subr.mxu1 %v2334_v0 }
  0x8f   : > { %v307_v25 = vsel %vm303_vm1, %v288_v24, %v290_v23  ;;  %2202 = vmatpush3.msra.mxu1 %v290_v23 }
  0x90   : > { %356 = vmatprep.subr.mxu0 %v307_v25  ;;  %1407 = vrot.lane.b32.xlu0 %v2408_v5, %s2341_s8 }
  0x91   : > { %1403 = vrot.lane.b32.xlu1 %v2410_v6, %s2341_s8  ;;  %2203 = vmatprep.subr.mxu1 %v2334_v0 }
  0x92   : > { %v286_v26 = vpop.permute.xlu0 %285  ;;  %v282_v27 = vpop.permute.xlu1 %281 }
  0x93   : > { %v306_v28 = vsel %vm303_vm1, %v286_v26, %v288_v24  ;;  %v2344_v24 = vmov 0  }
  0x94   : > { %357 = vmatpush1.msra.mxu0 %v306_v28  ;;  %1399 = vrot.lane.b32.xlu0 %v2416_v8, %s2341_s8 }
  0x95   : > { %1401 = vrot.lane.b32.xlu1 %v2414_v7, %s2341_s8  ;;  %2323 = vset.pattern.permute.xlu0 %v2344_v24 }
  0x96   : > { %v284_v29 = vpop.permute.xlu0 %283  ;;  %v280_v30 = vpop.permute.xlu1 %279 }
  0x97   : > { %2204 = vmatpush3.msra.mxu1 %v284_v29  ;;  %v305_v31 = vsel %vm303_vm1, %v282_v27, %v284_v29  ;;  %v304_v32 = vsel %vm303_vm1, %v280_v30, %v282_v27  ;;  %v1971_v27 = vld [vmem:[%s2770_s2] sm:$0xff] }
  0x98   : > { %1397 = vrot.lane.b32.xlu0 %v2422_v9, %s2341_s8  ;;  %358 = vmatprep.subr.mxu0 %v305_v31 }
  0x99   : > { %2208 = vmatprep.subr.mxu1 %v2334_v0  ;;  %1393 = vrot.lane.b32.xlu1 %v2424_v10, %s2341_s8 }
  0x9a   : > { %359 = vmatpush1.msra.mxu0 %v304_v32  ;;  %2206 = vmatmul.mubr.msk.f32.vlgmr.msra.gmra.mxu1 %vm324_vm2, %v2124_v33  ;;  %v636_v34 = vpop.permute.xlu0 %635  ;;  %v638_v35 = vpop.permute.xlu1 %637 }
  0x9b   : > { %2209 = vmatpush3.msra.mxu1 %v2402_v3  ;;  %496 = vmatprep.subr.mxu0 %v2396_v1  ;;  %v647_v41 = vsel %vm639_vm3, %v636_v34, %v638_v35 }
  0x9c   : > { %2210 = vmatprep.subr.mxu1 %v2334_v0  ;;  %2125 = vmatmul.mubr.msk.f32.vlgmr.msra.gmra.mxu0 %vm324_vm2, %v2124_v33 }
  0x9d   : > { %497 = vmatpush1.msra.mxu0 %v2398_v2  ;;  %2211 = vmatpush3.msra.mxu1 %v2408_v5 }
  0x9e   : > { %1395 = vrot.lane.b32.xlu0 %v2428_v11, %s2341_s8  ;;  %2212 = vmatprep.subr.mxu1 %v2334_v0  ;;  %v634_v36 = vpop.permute.xlu0 %633  ;;  %v630_v37 = vpop.permute.xlu1 %629 }
  0x9f   : > { %1391 = vrot.lane.b32.xlu1 %v2430_v12, %s2341_s8  ;;  %498 = vmatprep.subr.mxu0 %v2404_v4  ;;  %v646_v44 = vsel %vm639_vm3, %v634_v36, %v636_v34  ;;  %v2135_v34 = vld [vmem:[%s2769_s1 + $0x20] sm:$0xff] }
  0xa0   : > { %499 = vmatpush1.msra.mxu0 %v2410_v6  ;;  %2213 = vmatpush3.msra.mxu1 %v2414_v7 }
  0xa1   : > { %2214 = vmatprep.subr.mxu1 %v2334_v0  ;;  %500 = vmatprep.subr.mxu0 %v2416_v8 }
  0xa2   : > { %501 = vmatpush1.msra.mxu0 %v2422_v9  ;;  %2215 = vmatpush3.msra.mxu1 %v2428_v11  ;;  %v632_v39 = vpop.permute.xlu0 %631  ;;  %v628_v40 = vpop.permute.xlu1 %627 }
  0xa3   : > { %1605 = vrot.lane.b32.xlu0 %v2396_v1, %s2342_s13  ;;  %2216 = vmatprep.mubr.msk.f32.mxu1 %vm2336_vm0, %v2334_v0  ;;  %v645_v45 = vsel %vm639_vm3, %v630_v37, %v632_v39  ;;  %v644_v46 = vsel %vm639_vm3, %v628_v40, %v630_v37 }
  0xa4   : > { %2219 = vmatprep.subr.mxu1 %v2334_v0  ;;  %1607 = vrot.lane.b32.xlu1 %v2402_v3, %s2342_s13 }
  0xa5   : > { %502 = vmatprep.subr.mxu0 %v2424_v10  ;;  %2217 = vmatmul.mubr.msk.f32.vlgmr.msra.gmra.mxu1 %vm324_vm2, %v264_v38 }
  0xa6   : > { %503 = vmatpush1.msra.mxu0 %v2430_v12  ;;  %2220 = vmatpush3.msra.mxu1 %v638_v35  ;;  %v624_v42 = vpop.permute.xlu0 %623  ;;  %v626_v43 = vpop.permute.xlu1 %625 }
  0xa7   : > { %536 = vmatprep.mubr.f32.mxu0 %v2334_v0  ;;  %687 = vmatprep.subr.mxu0 %v647_v41  ;;  %v643_v47 = vsel %vm639_vm3, %v624_v42, %v626_v43 }
  0xa8   : > { %2221 = vmatprep.subr.mxu1 %v2334_v0  ;;  %2127 = vmatmul.mubr.msk.f32.vlgmr.msra.gmra.mxu0 %vm324_vm2, %v264_v38 }
  0xa9   : > { %688 = vmatpush1.msra.mxu0 %v646_v44  ;;  %2222 = vmatpush3.msra.mxu1 %v632_v39 }
  0xaa   : > { %1603 = vrot.lane.b32.xlu0 %v2398_v2, %s2342_s13  ;;  %1599 = vrot.lane.b32.xlu1 %v2404_v4, %s2342_s13  ;;  %v622_v48 = vpop.permute.xlu0 %621  ;;  %v618_v49 = vpop.permute.xlu1 %617 }
  0xab   : > { %689 = vmatprep.subr.mxu0 %v645_v45  ;;  %2223 = vmatprep.subr.mxu1 %v2334_v0  ;;  %v642_v50 = vsel %vm639_vm3, %v622_v48, %v624_v42 }
  0xac   : > { %690 = vmatpush1.msra.mxu0 %v644_v46  ;;  %2224 = vmatpush3.msra.mxu1 %v626_v43 }
  0xad   : > { %691 = vmatprep.subr.mxu0 %v643_v47  ;;  %2225 = vmatprep.subr.mxu1 %v2334_v0 }
  0xae   : > { %1601 = vrot.lane.b32.xlu0 %v2408_v5, %s2342_s13  ;;  %1597 = vrot.lane.b32.xlu1 %v2410_v6, %s2342_s13  ;;  %v620_v51 = vpop.permute.xlu0 %619  ;;  %v616_v52 = vpop.permute.xlu1 %615 }
  0xaf   : > { %692 = vmatpush1.msra.mxu0 %v642_v50  ;;  %v640_v53 = vsel %vm639_vm3, %v616_v52, %v618_v49  ;;  %2226 = vmatpush3.msra.mxu1 %v620_v51  ;;  %v641_v54 = vsel %vm639_vm3, %v618_v49, %v620_v51 }
  0xb0   : > { %693 = vmatprep.subr.mxu0 %v641_v54  ;;  %2227 = vmatprep.mubr.msk.f32.mxu1 %vm2336_vm0, %v2334_v0 }
  0xb1   : > { %694 = vmatpush1.msra.mxu0 %v640_v53  ;;  %2230 = vmatprep.subr.mxu1 %v2334_v0 }
  0xb2   : > { %1593 = vrot.lane.b32.xlu0 %v2416_v8, %s2342_s13  ;;  %1595 = vrot.lane.b32.xlu1 %v2414_v7, %s2342_s13  ;;  %v830_v56 = vpop.permute.xlu0 %829  ;;  %v832_v57 = vpop.permute.xlu1 %831 }
  0xb3   : > { %2228 = vmatmul.mubr.msk.f32.vlgmr.msra.gmra.mxu1 %vm324_vm2, %v2129_v55  ;;  %v841_v58 = vsel %vm833_vm4, %v830_v56, %v832_v57  ;;  %727 = vmatprep.mubr.f32.mxu0 %v2334_v0 }
  0xb4   : > { %881 = vmatprep.subr.mxu0 %v841_v58  ;;  %2231 = vmatpush3.msra.mxu1 %v832_v57 }
  0xb5   : > { %2130 = vmatmul.mubr.msk.f32.vlgmr.msra.gmra.mxu0 %vm324_vm2, %v2129_v55  ;;  %2232 = vmatprep.subr.mxu1 %v2334_v0  ;;  %v2138_v55 = vld [vmem:[%s2769_s1 + $0x28] sm:$0xff] }
  0xb6   : > { %1591 = vrot.lane.b32.xlu0 %v2422_v9, %s2342_s13  ;;  %1587 = vrot.lane.b32.xlu1 %v2424_v10, %s2342_s13  ;;  %v828_v59 = vpop.permute.xlu0 %827  ;;  %v824_v60 = vpop.permute.xlu1 %823 }
  0xb7   : > { %v840_v61 = vsel %vm833_vm4, %v828_v59, %v830_v56  ;;  %2238 = vmatprep.mubr.msk.f32.mxu1 %vm2336_vm0, %v2334_v0  ;;  %921 = vmatprep.mubr.f32.mxu0 %v2334_v0 }
  0xb8   : > { %882 = vmatpush1.msra.mxu0 %v840_v61 }
  0xba   : > { %1589 = vrot.lane.b32.xlu0 %v2428_v11, %s2342_s13  ;;  %1585 = vrot.lane.b32.xlu1 %v2430_v12, %s2342_s13  ;;  %v826_v62 = vpop.permute.xlu0 %825  ;;  %v822_v63 = vpop.permute.xlu1 %821 }
  0xbb   : > { %v838_v13 = vsel %vm833_vm4, %v822_v63, %v824_v60  ;;  %2233 = vmatpush3.msra.mxu1 %v826_v62  ;;  %v839_v14 = vsel %vm833_vm4, %v824_v60, %v826_v62 }
  0xbc   : > { %883 = vmatprep.subr.mxu0 %v839_v14  ;;  %2234 = vmatprep.subr.mxu1 %v2334_v0 }
  0xbd   : > { %884 = vmatpush1.msra.mxu0 %v838_v13 }
  0xbe   : > { %1799 = vrot.lane.b32.xlu0 %v2396_v1, %s2343_s16  ;;  %1801 = vrot.lane.b32.xlu1 %v2402_v3, %s2343_s16  ;;  %v818_v15 = vpop.permute.xlu0 %817  ;;  %v820_v16 = vpop.permute.xlu1 %819 }
  0xbf   : > { %v837_v17 = vsel %vm833_vm4, %v818_v15, %v820_v16  ;;  %2235 = vmatpush3.msra.mxu1 %v820_v16 }
  0xc0   : > { %885 = vmatprep.subr.mxu0 %v837_v17  ;;  %2236 = vmatprep.subr.mxu1 %v2334_v0 }
  0xc2   : > { %1797 = vrot.lane.b32.xlu0 %v2398_v2, %s2343_s16  ;;  %1793 = vrot.lane.b32.xlu1 %v2404_v4, %s2343_s16  ;;  %v816_v18 = vpop.permute.xlu0 %815  ;;  %v812_v19 = vpop.permute.xlu1 %811  ;;  %v2132_v2 = vld [vmem:[%s2769_s1 + $0x18] sm:$0xff] }
  0xc3   : > { %v836_v1 = vsel %vm833_vm4, %v816_v18, %v818_v15 }
  0xc4   : > { %886 = vmatpush1.msra.mxu0 %v836_v1 }
  0xc6   : > { %1795 = vrot.lane.b32.xlu0 %v2408_v5, %s2343_s16  ;;  %1791 = vrot.lane.b32.xlu1 %v2410_v6, %s2343_s16  ;;  %v814_v3 = vpop.permute.xlu0 %813  ;;  %v810_v20 = vpop.permute.xlu1 %809 }
  0xc7   : > { %v834_v21 = vsel %vm833_vm4, %v810_v20, %v812_v19  ;;  %2237 = vmatpush3.msra.mxu1 %v814_v3  ;;  %v835_v4 = vsel %vm833_vm4, %v812_v19, %v814_v3 }
  0xc8   : > { %887 = vmatprep.subr.mxu0 %v835_v4  ;;  %2241 = vmatprep.subr.mxu1 %v2334_v0 }
  0xc9   : > { %888 = vmatpush1.msra.mxu0 %v834_v21  ;;  %2239 = vmatmul.mubr.msk.f32.vlgmr.msra.gmra.mxu1 %vm324_vm2, %v2132_v2 }
  0xca   : > { %1787 = vrot.lane.b32.xlu0 %v2416_v8, %s2343_s16  ;;  %1789 = vrot.lane.b32.xlu1 %v2414_v7, %s2343_s16  ;;  %v1024_v5 = vpop.permute.xlu0 %1023  ;;  %v1026_v6 = vpop.permute.xlu1 %1025 }
  0xcb   : > { %v1035_v22 = vsel %vm1027_vm5, %v1024_v5, %v1026_v6  ;;  %2242 = vmatpush3.msra.mxu1 %v1026_v6  ;;  %2133 = vmatmul.mubr.msk.f32.vlgmr.msra.gmra.mxu0 %vm324_vm2, %v2132_v2  ;;  %v2141_v2 = vld [vmem:[%s2769_s1 + $0x30] sm:$0xff] }
  0xcc   : > { %1075 = vmatprep.subr.mxu0 %v1035_v22  ;;  %2243 = vmatprep.subr.mxu1 %v2334_v0 }
  0xcd   : > { %2249 = vmatprep.mubr.msk.f32.mxu1 %vm2336_vm0, %v2334_v0  ;;  %1115 = vmatprep.mubr.f32.mxu0 %v2334_v0 }
  0xce   : > { %1785 = vrot.lane.b32.xlu0 %v2422_v9, %s2343_s16  ;;  %1781 = vrot.lane.b32.xlu1 %v2424_v10, %s2343_s16  ;;  %v1022_v7 = vpop.permute.xlu0 %1021  ;;  %v1018_v8 = vpop.permute.xlu1 %1017 }
  0xcf   : > { %v1034_v23 = vsel %vm1027_vm5, %v1022_v7, %v1024_v5 }
  0xd0   : > { %1076 = vmatpush1.msra.mxu0 %v1034_v23 }
  0xd2   : > { %1783 = vrot.lane.b32.xlu0 %v2428_v11, %s2343_s16  ;;  %1779 = vrot.lane.b32.xlu1 %v2430_v12, %s2343_s16  ;;  %v1020_v25 = vpop.permute.xlu0 %1019  ;;  %v1016_v26 = vpop.permute.xlu1 %1015 }
  0xd3   : > { %v1032_v9 = vsel %vm1027_vm5, %v1016_v26, %v1018_v8  ;;  %2244 = vmatpush3.msra.mxu1 %v1020_v25  ;;  %v1033_v10 = vsel %vm1027_vm5, %v1018_v8, %v1020_v25 }
  0xd4   : > { %1077 = vmatprep.subr.mxu0 %v1033_v10  ;;  %2245 = vmatprep.subr.mxu1 %v2334_v0 }
  0xd5   : > { %1078 = vmatpush1.msra.mxu0 %v1032_v9 }
  0xd6   : > { %v1012_v28 = vpop.permute.xlu0 %1011  ;;  %v1014_v11 = vpop.permute.xlu1 %1013  ;;  %1974 = vperm.xlu0 %2323, %v1971_v27  }
  0xd7   : > { %v1031_v12 = vsel %vm1027_vm5, %v1012_v28, %v1014_v11  ;;  %2246 = vmatpush3.msra.mxu1 %v1014_v11 }
  0xd8   : > { %1079 = vmatprep.subr.mxu0 %v1031_v12  ;;  %2247 = vmatprep.subr.mxu1 %v2334_v0 }
  0xda   : > { %v1010_v29 = vpop.permute.xlu0 %1009  ;;  %v1006_v30 = vpop.permute.xlu1 %1005 }
  0xdb   : > { %v1030_v31 = vsel %vm1027_vm5, %v1010_v29, %v1012_v28 }
  0xdc   : > { %1080 = vmatpush1.msra.mxu0 %v1030_v31 }
  0xde   : > { %v1008_v32 = vpop.permute.xlu0 %1007  ;;  %v1004_v33 = vpop.permute.xlu1 %1003 }
  0xdf   : > { %v1028_v35 = vsel %vm1027_vm5, %v1004_v33, %v1006_v30  ;;  %2248 = vmatpush3.msra.mxu1 %v1008_v32  ;;  %v1029_v36 = vsel %vm1027_vm5, %v1006_v30, %v1008_v32  ;;  %v2144_v32 = vld [vmem:[%s2769_s1 + $0x38] sm:$0xff] }
  0xe0   : > { %1081 = vmatprep.subr.mxu0 %v1029_v36  ;;  %2252 = vmatprep.subr.mxu1 %v2334_v0 }
  0xe1   : > { %1082 = vmatpush1.msra.mxu0 %v1028_v35  ;;  %2250 = vmatmul.mubr.msk.f32.vlgmr.msra.gmra.mxu1 %vm324_vm2, %v2135_v34 }
  0xe2   : > { %v1218_v37 = vpop.permute.xlu0 %1217  ;;  %v1220_v38 = vpop.permute.xlu1 %1219  ;;  %2136 = vmatmul.mubr.msk.f32.vlgmr.msra.gmra.mxu0 %vm324_vm2, %v2135_v34  ;;  %2260 = vmatprep.mubr.msk.f32.mxu1 %vm2336_vm0, %v2334_v0 }
  0xe3   : > { %v1229_v39 = vsel %vm1221_vm6, %v1218_v37, %v1220_v38  ;;  %2253 = vmatpush3.msra.mxu1 %v1220_v38  ;;  %1309 = vmatprep.mubr.f32.mxu0 %v2334_v0 }
  0xe4   : > { %1269 = vmatprep.subr.mxu0 %v1229_v39  ;;  %2254 = vmatprep.subr.mxu1 %v2334_v0 }
  0xe6   : > { %v1216_v40 = vpop.permute.xlu0 %1215  ;;  %v1212_v41 = vpop.permute.xlu1 %1211 }
  0xe7   : > { %v1228_v42 = vsel %vm1221_vm6, %v1216_v40, %v1218_v37 }
  0xe8   : > { %1270 = vmatpush1.msra.mxu0 %v1228_v42 }
  0xea   : > { %v1214_v43 = vpop.permute.xlu0 %1213  ;;  %v1210_v44 = vpop.permute.xlu1 %1209 }
  0xeb   : > { %v1226_v45 = vsel %vm1221_vm6, %v1210_v44, %v1212_v41  ;;  %2255 = vmatpush3.msra.mxu1 %v1214_v43  ;;  %v1227_v46 = vsel %vm1221_vm6, %v1212_v41, %v1214_v43 }
  0xec   : > { %1271 = vmatprep.subr.mxu0 %v1227_v46  ;;  %2256 = vmatprep.subr.mxu1 %v2334_v0 }
  0xed   : > { %1272 = vmatpush1.msra.mxu0 %v1226_v45 }
  0xee   : > { %v1206_v47 = vpop.permute.xlu0 %1205  ;;  %v1208_v48 = vpop.permute.xlu1 %1207 }
  0xef   : > { %v1225_v49 = vsel %vm1221_vm6, %v1206_v47, %v1208_v48  ;;  %2257 = vmatpush3.msra.mxu1 %v1208_v48 }
  0xf0   : > { %1273 = vmatprep.subr.mxu0 %v1225_v49  ;;  %2258 = vmatprep.subr.mxu1 %v2334_v0 }
  0xf2   : > { %v1204_v50 = vpop.permute.xlu0 %1203  ;;  %v1200_v51 = vpop.permute.xlu1 %1199 }
  0xf3   : > { %v1224_v52 = vsel %vm1221_vm6, %v1204_v50, %v1206_v47 }
  0xf4   : > { %1274 = vmatpush1.msra.mxu0 %v1224_v52 }
  0xf6   : > { %v1202_v53 = vpop.permute.xlu0 %1201  ;;  %v1198_v54 = vpop.permute.xlu1 %1197 }
  0xf7   : > { %v1222_v56 = vsel %vm1221_vm6, %v1198_v54, %v1200_v51  ;;  %2259 = vmatpush3.msra.mxu1 %v1202_v53  ;;  %v1223_v57 = vsel %vm1221_vm6, %v1200_v51, %v1202_v53  ;;  %v2147_v53 = vld [vmem:[%s2769_s1 + $0x40] sm:$0xff] }
  0xf8   : > { %1275 = vmatprep.subr.mxu0 %v1223_v57  ;;  %2263 = vmatprep.subr.mxu1 %v2334_v0 }
  0xf9   : > { %1276 = vmatpush1.msra.mxu0 %v1222_v56  ;;  %2261 = vmatmul.mubr.msk.f32.vlgmr.msra.gmra.mxu1 %vm324_vm2, %v2138_v55 }
  0xfa   : > { %v1412_v58 = vpop.permute.xlu0 %1411  ;;  %2139 = vmatmul.mubr.msk.f32.vlgmr.msra.gmra.mxu0 %vm324_vm2, %v2138_v55  ;;  %2271 = vmatprep.mubr.msk.f32.mxu1 %vm2336_vm0, %v2334_v0 }
  0xfb   : > { %v1414_v59 = vpop.permute.xlu1 %1413  ;;  %1503 = vmatprep.mubr.f32.mxu0 %v2334_v0 }
  0xfc   : > { %v1423_v60 = vsel %vm1415_vm7, %v1412_v58, %v1414_v59  ;;  %2264 = vmatpush3.msra.mxu1 %v1414_v59 }
  0xfd   : > { %1463 = vmatprep.subr.mxu0 %v1423_v60  ;;  %2265 = vmatprep.subr.mxu1 %v2334_v0 }
  0xfe   : > { %v1410_v61 = vpop.permute.xlu0 %1409 }
  0xff   : > { %v1422_v62 = vsel %vm1415_vm7, %v1410_v61, %v1412_v58  ;;  %v1406_v63 = vpop.permute.xlu1 %1405 }
 0x100   : > { %1464 = vmatpush1.msra.mxu0 %v1422_v62 }
 0x102   : > { %v1408_v13 = vpop.permute.xlu0 %1407 }
 0x103   : > { %v1404_v14 = vpop.permute.xlu1 %1403  ;;  %2266 = vmatpush3.msra.mxu1 %v1408_v13  ;;  %v1421_v15 = vsel %vm1415_vm7, %v1406_v63, %v1408_v13 }
 0x104   : > { %v1420_v16 = vsel %vm1415_vm7, %v1404_v14, %v1406_v63  ;;  %1465 = vmatprep.subr.mxu0 %v1421_v15  ;;  %2267 = vmatprep.subr.mxu1 %v2334_v0 }
 0x105   : > { %1466 = vmatpush1.msra.mxu0 %v1420_v16 }
 0x106   : > { %v1400_v17 = vpop.permute.xlu0 %1399 }
 0x107   : > { %v1402_v18 = vpop.permute.xlu1 %1401 }
 0x108   : > { %v1419_v19 = vsel %vm1415_vm7, %v1400_v17, %v1402_v18  ;;  %2268 = vmatpush3.msra.mxu1 %v1402_v18 }
 0x109   : > { %1467 = vmatprep.subr.mxu0 %v1419_v19  ;;  %2269 = vmatprep.subr.mxu1 %v2334_v0 }
 0x10a   : > { %v1398_v1 = vpop.permute.xlu0 %1397 }
 0x10b   : > { %v1418_v3 = vsel %vm1415_vm7, %v1398_v1, %v1400_v17  ;;  %v1394_v20 = vpop.permute.xlu1 %1393 }
 0x10c   : > { %1468 = vmatpush1.msra.mxu0 %v1418_v3 }
 0x110   : > { %v1396_v21 = vpop.permute.xlu0 %1395 }
 0x111   : > { %v1392_v4 = vpop.permute.xlu1 %1391  ;;  %2270 = vmatpush3.msra.mxu1 %v1396_v21  ;;  %v1417_v5 = vsel %vm1415_vm7, %v1394_v20, %v1396_v21 }
 0x112   : > { %v1416_v6 = vsel %vm1415_vm7, %v1392_v4, %v1394_v20  ;;  %1469 = vmatprep.subr.mxu0 %v1417_v5  ;;  %2272 = vmatmul.mubr.msk.f32.vlgmr.msra.gmra.mxu1 %vm324_vm2, %v2141_v2 }
 0x113   : > { %1470 = vmatpush1.msra.mxu0 %v1416_v6  ;;  %2274 = vmatprep.subr.mxu1 %v2334_v0 }
 0x114   : > { %2142 = vmatmul.mubr.msk.f32.vlgmr.msra.gmra.mxu0 %vm324_vm2, %v2141_v2  ;;  %2282 = vmatprep.mubr.msk.f32.mxu1 %vm2336_vm0, %v2334_v0 }
 0x115   : > { %v1606_v22 = vpop.permute.xlu0 %1605  ;;  %1697 = vmatprep.mubr.f32.mxu0 %v2334_v0 }
 0x116   : > { %v1608_v7 = vpop.permute.xlu1 %1607 }
 0x117   : > { %v1617_v8 = vsel %vm1609_vm8, %v1606_v22, %v1608_v7  ;;  %2275 = vmatpush3.msra.mxu1 %v1608_v7 }
 0x118   : > { %1657 = vmatprep.subr.mxu0 %v1617_v8  ;;  %2276 = vmatprep.subr.mxu1 %v2334_v0 }
 0x11c   : > { %v1604_v23 = vpop.permute.xlu0 %1603  ;;  %v1600_v24 = vpop.permute.xlu1 %1599 }
 0x11d   : > { %v1616_v25 = vsel %vm1609_vm8, %v1604_v23, %v1606_v22 }
 0x11e   : > { %1658 = vmatpush1.msra.mxu0 %v1616_v25 }
 0x120   : > { %v1602_v26 = vpop.permute.xlu0 %1601  ;;  %v1598_v9 = vpop.permute.xlu1 %1597 }
 0x121   : > { %v1614_v10 = vsel %vm1609_vm8, %v1598_v9, %v1600_v24  ;;  %2277 = vmatpush3.msra.mxu1 %v1602_v26  ;;  %v1615_v27 = vsel %vm1609_vm8, %v1600_v24, %v1602_v26 }
 0x122   : > { %1659 = vmatprep.subr.mxu0 %v1615_v27  ;;  %2278 = vmatprep.subr.mxu1 %v2334_v0 }
 0x123   : > { %1660 = vmatpush1.msra.mxu0 %v1614_v10 }
 0x124   : > { %v1594_v28 = vpop.permute.xlu0 %1593  ;;  %v1596_v11 = vpop.permute.xlu1 %1595 }
 0x125   : > { %v1613_v12 = vsel %vm1609_vm8, %v1594_v28, %v1596_v11  ;;  %2279 = vmatpush3.msra.mxu1 %v1596_v11 }
 0x126   : > { %1661 = vmatprep.subr.mxu0 %v1613_v12  ;;  %2280 = vmatprep.subr.mxu1 %v2334_v0 }
 0x128   : > { %v1592_v29 = vpop.permute.xlu0 %1591  ;;  %v1588_v30 = vpop.permute.xlu1 %1587 }
 0x129   : > { %v1612_v31 = vsel %vm1609_vm8, %v1592_v29, %v1594_v28 }
 0x12a   : > { %1662 = vmatpush1.msra.mxu0 %v1612_v31 }
 0x12c   : > { %v1590_v33 = vpop.permute.xlu0 %1589  ;;  %v1586_v34 = vpop.permute.xlu1 %1585 }
 0x12d   : > { %v1610_v35 = vsel %vm1609_vm8, %v1586_v34, %v1588_v30  ;;  %2281 = vmatpush3.msra.mxu1 %v1590_v33  ;;  %v1611_v36 = vsel %vm1609_vm8, %v1588_v30, %v1590_v33  ;;  %v1982_v34 = vlaneseq }
 0x12e   : > { %1663 = vmatprep.subr.mxu0 %v1611_v36  ;;  %2283 = vmatmul.mubr.msk.f32.vlgmr.msra.gmra.mxu1 %vm324_vm2, %v2144_v32 }
 0x12f   : > { %1664 = vmatpush1.msra.mxu0 %v1610_v35  ;;  %2285 = vmatprep.subr.mxu1 %v2334_v0 }
 0x130   : > { %v1800_v37 = vpop.permute.xlu0 %1799  ;;  %2145 = vmatmul.mubr.msk.f32.vlgmr.msra.gmra.mxu0 %vm324_vm2, %v2144_v32  ;;  %v1802_v38 = vpop.permute.xlu1 %1801  ;;  %2293 = vmatprep.mubr.msk.f32.mxu1 %vm2336_vm0, %v2334_v0 }
 0x131   : > { %v1811_v39 = vsel %vm1803_vm9, %v1800_v37, %v1802_v38  ;;  %2286 = vmatpush3.msra.mxu1 %v1802_v38  ;;  %1891 = vmatprep.mubr.f32.mxu0 %v2334_v0 }
 0x132   : > { %1851 = vmatprep.subr.mxu0 %v1811_v39  ;;  %2287 = vmatprep.subr.mxu1 %v2334_v0  ;;  %v1983_v39 = vshrl.u32 %v1982_v34, 7 }
 0x134   : > { %v1798_v40 = vpop.permute.xlu0 %1797  ;;  %v1794_v41 = vpop.permute.xlu1 %1793 }
 0x135   : > { %v1810_v42 = vsel %vm1803_vm9, %v1798_v40, %v1800_v37 }
 0x136   : > { %1852 = vmatpush1.msra.mxu0 %v1810_v42 }
 0x138   : > { %v1796_v43 = vpop.permute.xlu0 %1795  ;;  %v1792_v44 = vpop.permute.xlu1 %1791 }
 0x139   : > { %v1808_v45 = vsel %vm1803_vm9, %v1792_v44, %v1794_v41  ;;  %2288 = vmatpush3.msra.mxu1 %v1796_v43  ;;  %v1809_v46 = vsel %vm1803_vm9, %v1794_v41, %v1796_v43 }
 0x13a   : > { %1853 = vmatprep.subr.mxu0 %v1809_v46  ;;  %2289 = vmatprep.subr.mxu1 %v2334_v0 }
 0x13b   : > { %1854 = vmatpush1.msra.mxu0 %v1808_v45 }
 0x13c   : > { %v1788_v47 = vpop.permute.xlu0 %1787  ;;  %v1790_v48 = vpop.permute.xlu1 %1789 }
 0x13d   : > { %v1807_v49 = vsel %vm1803_vm9, %v1788_v47, %v1790_v48  ;;  %2290 = vmatpush3.msra.mxu1 %v1790_v48  ;;  %v1992_v48 = vsub.s32 2, %v1983_v39 }
 0x13e   : > { %1855 = vmatprep.subr.mxu0 %v1807_v49  ;;  %2291 = vmatprep.subr.mxu1 %v2334_v0 }
 0x140   : > { %v1786_v50 = vpop.permute.xlu0 %1785  ;;  %v1782_v51 = vpop.permute.xlu1 %1781 }
 0x141   : > { %v1806_v52 = vsel %vm1803_vm9, %v1786_v50, %v1788_v47  ;;  %v1984_v47 = vsub.s32 0, %v1983_v39 }
 0x142   : > { %1856 = vmatpush1.msra.mxu0 %v1806_v52 }
 0x144   : > { %v1784_v54 = vpop.permute.xlu0 %1783  ;;  %v1780_v55 = vpop.permute.xlu1 %1779 }
 0x145   : > { %v1804_v56 = vsel %vm1803_vm9, %v1780_v55, %v1782_v51  ;;  %2292 = vmatpush3.msra.mxu1 %v1784_v54  ;;  %v1805_v57 = vsel %vm1803_vm9, %v1782_v51, %v1784_v54  ;;  %v1988_v54 = vsub.s32 1, %v1983_v39  ;;  %v2044_v39 = vld [vmem:[%s2772_s4] sm:$0xff] }
 0x146   : > { %1857 = vmatprep.subr.mxu0 %v1805_v57  ;;  %2294 = vmatmul.mubr.msk.f32.vlgmr.msra.gmra.mxu1 %vm324_vm2, %v2147_v53 }
 0x147   : > { %1858 = vmatpush1.msra.mxu0 %v1804_v56 }
 0x148   : > { %2148 = vmatmul.mubr.msk.f32.vlgmr.msra.gmra.mxu0 %vm324_vm2, %v2147_v53  ;;  %v1980_v53 = vld [vmem:[%s2771_s3] sm:$0x7] }
 0x151   : > { %v1975_v52 = vpop.permute.xlu0 %1974 }
 0x15a   : > { %v465_v0 = vpop.f32.mrf.mxu1 }
 0x15c   : > { %v2207_v58 = vpop.f32.mrf.mxu1  ;;  %v394_v2 = vpop.f32.mrf.mxu0 }
 0x15e   : > { %v396_v21 = vpop.f32.mrf.mxu0 }
 0x165   : > { %v609_v59 = vpop.f32.mrf.mxu1 }
 0x166   : > { %v610_v60 = vadd.f32 %v609_v59, %v465_v0 }
 0x167   : > { %v2218_v61 = vpop.f32.mrf.mxu1 }
 0x168   : > { %v538_v6 = vpop.f32.mrf.mxu0 }
 0x169   : > { %v539_v27 = vadd.f32 %v538_v6, %v394_v2 }
 0x16a   : > { %v540_v22 = vpop.f32.mrf.mxu0 }
 0x16b   : > { %v541_v28 = vadd.f32 %v540_v22, %v396_v21 }
 0x173   : > { %v800_v62 = vpop.f32.mrf.mxu1 }
 0x174   : > { %v806_v63 = vadd.f32 %v800_v62, %v610_v60  ;;  %v1993_v60 = vrot.slane %v1980_v53, %v1992_v48  ;;  %v1985_v62 = vrot.slane %v1980_v53, %v1984_v47  ;;  %v2052_v47 = vld [vmem:[%s2773_s5 + $0x10] sm:$0xff] }
 0x175   : > { %v2229_v13 = vpop.f32.mrf.mxu1  ;;  %v729_v7 = vpop.f32.mrf.mxu0 }
 0x176   : > { %v804_v12 = vadd.f32 %v729_v7, %v539_v27  ;;  %v1989_v13 = vrot.slane %v1980_v53, %v1988_v54 }
 0x177   : > { %v731_v8 = vpop.f32.mrf.mxu0 }
 0x178   : > { %v805_v29 = vadd.f32 %v731_v8, %v541_v28 }
 0x189   : > { %v994_v14 = vpop.f32.mrf.mxu1 }
 0x18a   : > { %v1000_v15 = vadd.f32 %v994_v14, %v806_v63 }
 0x18b   : > { %v2240_v16 = vpop.f32.mrf.mxu1  ;;  %v923_v23 = vpop.f32.mrf.mxu0 }
 0x18c   : > { %v998_v31 = vadd.f32 %v923_v23, %v804_v12 }
 0x18d   : > { %v925_v24 = vpop.f32.mrf.mxu0 }
 0x18e   : > { %v999_v33 = vadd.f32 %v925_v24, %v805_v29 }
 0x1a1   : > { %v1188_v17 = vpop.f32.mrf.mxu1 }
 0x1a2   : > { %v1194_v18 = vadd.f32 %v1188_v17, %v1000_v15  ;;  %v1117_v25 = vpop.f32.mrf.mxu0 }
 0x1a3   : > { %v2251_v19 = vpop.f32.mrf.mxu1  ;;  %v1192_v35 = vadd.f32 %v1117_v25, %v998_v31 }
 0x1a4   : > { %v1119_v10 = vpop.f32.mrf.mxu0 }
 0x1a5   : > { %v1193_v37 = vadd.f32 %v1119_v10, %v999_v33 }
 0x1b9   : > { %v1382_v1 = vpop.f32.mrf.mxu1 }
 0x1ba   : > { %v1388_v3 = vadd.f32 %v1382_v1, %v1194_v18  ;;  %v1311_v11 = vpop.f32.mrf.mxu0 }
 0x1bb   : > { %v2262_v20 = vpop.f32.mrf.mxu1  ;;  %v1386_v40 = vadd.f32 %v1311_v11, %v1192_v35 }
 0x1bc   : > { %v1313_v30 = vpop.f32.mrf.mxu0 }
 0x1bd   : > { %v1387_v42 = vadd.f32 %v1313_v30, %v1193_v37 }
 0x1d2   : > { %v1576_v4 = vpop.f32.mrf.mxu1 }
 0x1d3   : > { %v1582_v41 = vadd.f32 %v1576_v4, %v1388_v3 }
 0x1d4   : > { %v2273_v5 = vpop.f32.mrf.mxu1  ;;  %v1505_v32 = vpop.f32.mrf.mxu0 }
 0x1d5   : > { %v1580_v43 = vadd.f32 %v1505_v32, %v1386_v40  ;;  %v2045_v40 = vld [vmem:[%s2772_s4 + $0x8] sm:$0xff] }
 0x1d6   : > { %v1507_v36 = vpop.f32.mrf.mxu0 }
 0x1d7   : > { %v1581_v49 = vadd.f32 %v1507_v36, %v1387_v42 }
 0x1ee   : > { %v1770_v26 = vpop.f32.mrf.mxu1 }
 0x1ef   : > { %v1776_v44 = vadd.f32 %v1770_v26, %v1582_v41  ;;  %v2046_v41 = vld [vmem:[%s2772_s4 + $0x10] sm:$0xff] }
 0x1f0   : > { %v2284_v9 = vpop.f32.mrf.mxu1  ;;  %v1699_v38 = vpop.f32.mrf.mxu0 }
 0x1f1   : > { %v1774_v50 = vadd.f32 %v1699_v38, %v1580_v43 }
 0x1f2   : > { %v1701_v45 = vpop.f32.mrf.mxu0 }
 0x1f3   : > { %v1775_v57 = vadd.f32 %v1701_v45, %v1581_v49  ;;  %v2050_v45 = vld [vmem:[%s2773_s5] sm:$0xff] }
 0x206   : > { %v1964_v46 = vpop.f32.mrf.mxu1 }
 0x207   : > { %v1970_v51 = vadd.f32 %v1964_v46, %v1776_v44  ;;  %v2051_v46 = vld [vmem:[%s2773_s5 + $0x8] sm:$0xff] }
 0x208   : > { %v1893_v55 = vpop.f32.mrf.mxu0  ;;  %v2295_v56 = vpop.f32.mrf.mxu1 }
 0x209   : > { %v1968_v0 = vadd.f32 %v1893_v55, %v1774_v50  ;;  %v1979_v58 = vadd.f32 %v1975_v52, %v1970_v51 }
 0x20a   : > { %v1895_v59 = vpop.f32.mrf.mxu0 }
 0x20b   : > { %v1977_v61 = vadd.f32 %v1975_v52, %v1968_v0  ;;  %v1969_v63 = vadd.f32 %v1895_v59, %v1775_v57  ;;  %v1999_v15 = vmul.f32 %v1993_v60, %v1979_v58 }
 0x20d   : > { %v1978_v14 = vadd.f32 %v1975_v52, %v1969_v63  ;;  %v1997_v16 = vmul.f32 %v1985_v62, %v1977_v61  ;;  %v2001_v19 = vsel %vm324_vm2, %v1999_v15, 0.0 }
 0x20f   : > { %v1998_v17 = vmul.f32 %v1989_v13, %v1978_v14 }
 0x211   : > { %v2000_v18 = vadd.f32 %v1998_v17, %v1997_v16 }
 0x213   : > { %v2002_v1 = vadd.f32 %v2001_v19, %v2000_v18 }
 0x215   : > { %2003 = vadd.xlane.f32.xlu1 %v2002_v1 }
 0x29e   : > { %v2004_v3 = vpop.xlane.xlu1 %2003 }
 0x29f   : > { %v2005_v20 = vrot.slane %v2004_v3, 4 }
 0x2a1   : > { %v2006_v2 = vadd.f32 %v2005_v20, %v2004_v3 }
 0x2a3   : > { %v2007_v21 = vrot.slane %v2006_v2, 2 }
 0x2a5   : > { %v2008_v4 = vadd.f32 %v2007_v21, %v2006_v2 }
 0x2a7   : > { %v2009_v5 = vrot.slane %v2008_v4, 1 }
 0x2a9   : > { %v2010_v6 = vadd.f32 %v2009_v5, %v2008_v4 }
 0x2ab   : > { %2298 = vpush %v2010_v6 }
 0x2dc   : > { %s2299_s11 = spop %2298 }
 0x2dd   : > { %s2012_s12 = smul.f32 0.00048828125, %s2299_s11 }
 0x2df   : > { %v2013_v22 = vstv %s2012_s12 }
 0x2e0   : > { %v2014_v7 = vsub.f32 %v1977_v61, %v2013_v22  ;;  %v2015_v8 = vsub.f32 %v1978_v14, %v2013_v22  ;;  %v2016_v23 = vsub.f32 %v1979_v58, %v2013_v22 }
 0x2e2   : > { %v2017_v24 = vmul.f32 %v2014_v7, %v1985_v62  ;;  %v2018_v25 = vmul.f32 %v2015_v8, %v1989_v13  ;;  %v2019_v26 = vmul.f32 %v2016_v23, %v1993_v60 }
 0x2e4   : > { %v2020_v9 = vmul.f32 %v2017_v24, %v2017_v24  ;;  %v2021_v10 = vmul.f32 %v2018_v25, %v2018_v25  ;;  %v2022_v27 = vmul.f32 %v2019_v26, %v2019_v26 }
 0x2e6   : > { %v2023_v28 = vadd.f32 %v2021_v10, %v2020_v9  ;;  %v2024_v11 = vsel %vm324_vm2, %v2022_v27, 0.0 }
 0x2e8   : > { %v2025_v12 = vadd.f32 %v2024_v11, %v2023_v28 }
 0x2ea   : > { %2026 = vadd.xlane.f32.xlu0 %v2025_v12 }
 0x373   : > { %v2027_v29 = vpop.xlane.xlu0 %2026 }
 0x374   : > { %v2028_v30 = vrot.slane %v2027_v29, 4 }
 0x376   : > { %v2029_v31 = vadd.f32 %v2028_v30, %v2027_v29 }
 0x378   : > { %v2030_v32 = vrot.slane %v2029_v31, 2 }
 0x37a   : > { %v2031_v33 = vadd.f32 %v2030_v32, %v2029_v31 }
 0x37c   : > { %v2032_v34 = vrot.slane %v2031_v33, 1 }
 0x37e   : > { %v2033_v35 = vadd.f32 %v2032_v34, %v2031_v33 }
 0x380   : > { %2300 = vpush %v2033_v35 }
 0x3b1   : > { %s2301_s13 = spop %2300 }
 0x3b2   : > { %s2035_s14 = smul.f32 0.00048828125, %s2301_s13 }
 0x3b4   : > { %s2036_s15 = sadd.f32 1e-05, %s2035_s14 }
 0x3b6   : > { %v2037_v36 = vstv %s2036_s15 }
 0x3b7   : > { %2324 = vrsqrt.f32 %v2037_v36 }
 0x3c4   : > { %v2325_v37 = vpop.eup %2324 }
 0x3c5   : > { %2302 = vpush %v2325_v37 }
 0x3f6   : > { %s2303_s16 = spop %2302 }
 0x3f7   : > { %v2040_v38 = vstv %s2303_s16 }
 0x3f8   : > { %v2041_v42 = vmul.f32 %v2040_v38, %v2014_v7  ;;  %v2042_v43 = vmul.f32 %v2040_v38, %v2015_v8  ;;  %v2043_v44 = vmul.f32 %v2040_v38, %v2016_v23 }
 0x3fa   : > { %v2047_v48 = vmul.f32 %v2044_v39, %v2041_v42  ;;  %v2048_v49 = vmul.f32 %v2045_v40, %v2042_v43  ;;  %v2049_v50 = vmul.f32 %v2046_v41, %v2043_v44 }
 0x3fc   : > { %v2053_v51 = vadd.f32 %v2050_v45, %v2047_v48  ;;  %v2054_v52 = vadd.f32 %v2051_v46, %v2048_v49  ;;  %v2055_v53 = vadd.f32 %v2052_v47, %v2049_v50 }
 0x3fe   : > { %v2056_v54 = vmax.f32 %v2053_v51, 0.0  ;;  %v2057_v55 = vmax.f32 %v2054_v52, 0.0  ;;  %v2058_v56 = vmax.f32 %v2055_v53, 0.0 }
 0x400   : > { %2059 = vst [vmem:[%s251_s9] sm:$0xff] %v2056_v54  ;;  %2060 = vst [vmem:[%s251_s9 + $0x8] sm:$0xff] %v2057_v55 }
 0x401   : > { %2061 = vst.msk [vmem:[%s251_s9 + $0x10] sm:$0xff] %vm324_vm2, %v2058_v56 }
 0x402 PF: > { %s16_s21 = sadd.s32 1, %s2332_s21  }
 0x403   : > { %p13_p4 = scmp.ge.s32.totalorder %s16_s21, 4  }
 0x405   :  { %15 = sbr.rel (!%p13_p4) target bundleno = 1 (0x1), region = 82 }

</bundles_post_ra>
